<compile_context>
chip_gen: v7x
topology: tpu7x:2x2x1
jax: 0.10.0
libtpu: 0.0.40
codegen_flags: <defaults>
</compile_context>

<pallas_src>
import functools

import jax
import jax.numpy as jnp
from jax.experimental import pallas as pl
from jax.experimental.pallas import tpu as pltpu


def _recgat_kernel(h_all_ref, h_dst_ref, adj_ref, wsrcT_ref, wdst_ref, bgat_ref,
                   wihT_ref, bih_ref, bhh_ref, out_ref, *,
                   num_heads, out_feats, mm_dtype):
    H, F = num_heads, out_feats
    HF = H * F

    def nt_dot(a, b):  # contract the last (lane) axis of both operands: A @ B^T
        return jax.lax.dot_general(
            a, b, dimension_numbers=(((1,), (1,)), ((), ())),
            preferred_element_type=jnp.float32)

    h_all = h_all_ref[...]                          # (Np, Din)  all nodes (attention sources)
    h_dst = h_dst_ref[...]                          # (TN, Din)  dst tile (== GRU hidden h_prev)
    edge = adj_ref[...].astype(jnp.int32) > 0       # (TN, Np)   in-edge mask, adj[dst, src]

    # ---- fused src-side projection (one MXU call): [W_gat | a_l-folded]^T ----
    # proj_srcT[c, u] = (h_all @ [W_gat | M_l])[u, c]  -> feat^T rows + el rows,
    # with the src axis already on lanes (no activation transpose needed).
    proj_srcT = nt_dot(wsrcT_ref[...], h_all.astype(mm_dtype))      # (HF+H, Np)
    el = proj_srcT[HF:HF + H, :]                                    # (H, Np)

    # ---- fused dst-side projection (one MXU call): [a_r-folded | W_hh^T] ----
    proj_dst = jnp.dot(h_dst.astype(mm_dtype), wdst_ref[...],
                       preferred_element_type=jnp.float32)          # (TN, H+3F)
    er = proj_dst[:, :H]                                            # (TN, H)
    gh = proj_dst[:, H:] + bhh_ref[...]                             # (TN, 3F)

    # ---- per-head edge softmax + MXU aggregation ----
    # Static unroll: H is small; each head's (TN, Np) logits are consumed by the
    # aggregation matmul before the next head's are built (use lax.fori_loop if H
    # ever gets large enough for the live logits to spill).
    neg_inf = jnp.float32(-1e30)
    x_heads = []
    for hd in range(H):
        e = er[:, hd:hd + 1] + el[hd:hd + 1, :]                     # (TN, Np)
        e = jnp.where(e > 0.0, e, 0.2 * e)                          # LeakyReLU(0.2)
        e = jnp.where(edge, e, neg_inf)                             # mask non-edges
        e = e - jnp.max(e, axis=1, keepdims=True)
        p = jnp.where(edge, jnp.exp(e), 0.0)                        # unnormalized attn
        denom = jnp.sum(p, axis=1, keepdims=True)                   # (TN, 1)
        featT_h = proj_srcT[hd * F:(hd + 1) * F, :]                 # (F, Np)
        agg = nt_dot(p.astype(mm_dtype), featT_h.astype(mm_dtype))  # (TN, F) on MXU
        # normalize AFTER aggregation: EUP reciprocal + N*F multiplies
        x_heads.append(agg * pl.reciprocal(denom, approx=True))
    x = jnp.concatenate(x_heads, axis=1) + bgat_ref[...]            # (TN, HF) + GAT bias
    # TODO(synk): feat_drop / attn_drop not applied (module default dropout=0.0,
    # eval-mode semantics); first_cell=False path (hidden = h) implemented.

    # ---- GRUCell (PyTorch gate order r, z, n) ----
    gi = jnp.dot(x.astype(mm_dtype), wihT_ref[...],
                 preferred_element_type=jnp.float32) + bih_ref[...]  # (TN, 3F)
    r = jax.nn.sigmoid(gi[:, :F] + gh[:, :F])
    z = jax.nn.sigmoid(gi[:, F:2 * F] + gh[:, F:2 * F])
    n = jnp.tanh(gi[:, 2 * F:] + r * gh[:, 2 * F:])
    h_new = (1.0 - z) * n + z * h_dst

    # ---- ELU ----
    out_ref[...] = jnp.where(h_new > 0.0, h_new,
                             jnp.exp(jnp.minimum(h_new, 0.0)) - 1.0)


def _vmem_limit_bytes(np_nodes, tn, din, H, F):
    """Scoped-VMEM limit sized from the actual tile footprint (+ headroom)."""
    f32 = 4
    HF = H * F
    dbl = 2  # Pallas double-buffers pipelined blocks
    blocks = (np_nodes * din * f32            # h (all nodes)
              + tn * din * f32                # h (dst tile)
              + tn * np_nodes                 # adj tile (int8)
              + (HF + H) * din * f32          # fused src weight
              + din * (H + 3 * F) * f32       # fused dst weight
              + HF * f32 + HF * 3 * F * f32 + 2 * 3 * F * f32
              + tn * F * f32)                 # out tile
    live = ((HF + H) * np_nodes               # proj_srcT
            + tn * (H + 3 * F)                # proj_dst
            + 3 * tn * np_nodes               # per-head logits / p / mask
            + tn * HF + 2 * tn * 3 * F) * f32
    return int(min(dbl * blocks + live + (16 << 20), 64 << 20))


def recgat_block(h, adj, params, *, num_heads, out_feats, tile_n=256,
                 mm_dtype=jnp.float32):
    """h: (N, in_feats) f32; adj: (N, N) with adj[dst, src] != 0 for edge src->dst."""
    N, in_feats = h.shape
    H, F = num_heads, out_feats
    HF = H * F
    assert in_feats == F, "recurrent block: GAT input dim must equal GRU hidden dim"

    # ---- dst-row tiling (src axis kept whole; softmax is over in-edges) ----
    TN = min(tile_n, N)
    TN = max(32, ((TN + 31) // 32) * 32)      # int8 adj sublane tile is 32
    Np = pl.cdiv(N, TN) * TN

    adj_i8 = (adj > 0).astype(jnp.int8)
    h_p = h.astype(jnp.float32)
    if Np != N:
        h_p = jnp.pad(h_p, ((0, Np - N), (0, 0)))
        adj_i8 = jnp.pad(adj_i8, ((0, Np - N), (0, Np - N)))
        pad_idx = jnp.arange(N, Np)
        adj_i8 = adj_i8.at[pad_idx, pad_idx].set(1)   # keep padded rows finite (discarded)

    # ---- fold attention vectors into the projection and fuse the weights ----
    wgat = params["w_gat"].astype(jnp.float32)                        # (in, HF)
    wgat3 = wgat.reshape(in_feats, H, F)
    ml = jnp.einsum("ihf,hf->ih", wgat3, params["attn_l"])            # (in, H)
    mr = jnp.einsum("ihf,hf->ih", wgat3, params["attn_r"])            # (in, H)
    w_srcT = jnp.concatenate([wgat, ml], axis=1).T.astype(mm_dtype)   # (HF+H, in)
    w_dst = jnp.concatenate([mr, params["w_hh"].T], axis=1).astype(mm_dtype)  # (in, H+3F)
    w_ihT = params["w_ih"].T.astype(mm_dtype)                         # (HF, 3F)
    bgat = params["gat_bias"].reshape(1, HF).astype(jnp.float32)
    bih = params["b_ih"].reshape(1, 3 * F).astype(jnp.float32)
    bhh = params["b_hh"].reshape(1, 3 * F).astype(jnp.float32)

    kernel = functools.partial(_recgat_kernel, num_heads=H, out_feats=F,
                               mm_dtype=mm_dtype)
    out = pl.pallas_call(
        kernel,
        grid=(Np // TN,),
        in_specs=[
            pl.BlockSpec((Np, in_feats), lambda i: (0, 0)),          # h, all nodes (src)
            pl.BlockSpec((TN, in_feats), lambda i: (i, 0)),          # h, dst tile (GRU hidden)
            pl.BlockSpec((TN, Np), lambda i: (i, 0)),                # adj[dst tile, all src] i8
            pl.BlockSpec((HF + H, in_feats), lambda i: (0, 0)),      # [W_gat | M_l]^T
            pl.BlockSpec((in_feats, H + 3 * F), lambda i: (0, 0)),   # [M_r | W_hh^T]
            pl.BlockSpec((1, HF), lambda i: (0, 0)),                 # GAT bias
            pl.BlockSpec((HF, 3 * F), lambda i: (0, 0)),             # W_ih^T
            pl.BlockSpec((1, 3 * F), lambda i: (0, 0)),              # b_ih
            pl.BlockSpec((1, 3 * F), lambda i: (0, 0)),              # b_hh
        ],
        out_specs=pl.BlockSpec((TN, F), lambda i: (i, 0)),
        out_shape=jax.ShapeDtypeStruct((Np, F), jnp.float32),
        compiler_params=pltpu.CompilerParams(
            dimension_semantics=("parallel",),   # independent dst tiles (2 TCs on v7x)
            vmem_limit_bytes=_vmem_limit_bytes(Np, TN, in_feats, H, F),
        ),
    )(h_p, h_p, adj_i8, w_srcT, w_dst, bgat, w_ihT, bih, bhh)
    return out[:N]


def recgat_reference(h, adj, params, *, num_heads, out_feats):
    """Pure-JAX reference reproducing DGL GATConv + nn.GRUCell + F.elu."""
    N, _ = h.shape
    H, F = num_heads, out_feats
    feat = h @ params["w_gat"]                               # (N, H*F)
    feat3 = feat.reshape(N, H, F)
    el = jnp.sum(feat3 * params["attn_l"][None], axis=-1)    # (N, H)
    er = jnp.sum(feat3 * params["attn_r"][None], axis=-1)    # (N, H)
    e = er[:, None, :] + el[None, :, :]                      # (dst, src, H)
    e = jnp.where(e > 0.0, e, 0.2 * e)
    mask = adj[:, :, None] > 0
    e = jnp.where(mask, e, -1e30)
    e = e - jnp.max(e, axis=1, keepdims=True)
    p = jnp.where(mask, jnp.exp(e), 0.0)
    a = p / jnp.sum(p, axis=1, keepdims=True)
    rst = jnp.einsum("vuh,uhf->vhf", a, feat3)               # (N, H, F)
    x = rst.reshape(N, H * F) + params["gat_bias"]
    gi = x @ params["w_ih"].T + params["b_ih"]
    gh = h @ params["w_hh"].T + params["b_hh"]
    r = jax.nn.sigmoid(gi[:, :F] + gh[:, :F])
    z = jax.nn.sigmoid(gi[:, F:2 * F] + gh[:, F:2 * F])
    n = jnp.tanh(gi[:, 2 * F:] + r * gh[:, 2 * F:])
    h_new = (1.0 - z) * n + z * h
    return jnp.where(h_new > 0.0, h_new, jnp.exp(h_new) - 1.0)


if __name__ == "__main__":
    # Recurrent block => in_feats == out_feats (h is both the GAT input and the GRU hidden).
    N, FEATS, NUM_HEADS = 128, 32, 4          # HF = 128 -> lane-dense fused projections
    HF, F3 = NUM_HEADS * FEATS, 3 * FEATS

    key = jax.random.PRNGKey(0)
    ks = jax.random.split(key, 10)
    params = {
        "w_gat":    0.1 * jax.random.normal(ks[0], (FEATS, HF), jnp.float32),
        "attn_l":   0.1 * jax.random.normal(ks[1], (NUM_HEADS, FEATS), jnp.float32),
        "attn_r":   0.1 * jax.random.normal(ks[2], (NUM_HEADS, FEATS), jnp.float32),
        "gat_bias": 0.1 * jax.random.normal(ks[3], (HF,), jnp.float32),
        "w_ih":     0.1 * jax.random.normal(ks[4], (F3, HF), jnp.float32),
        "w_hh":     0.1 * jax.random.normal(ks[5], (F3, FEATS), jnp.float32),
        "b_ih":     0.1 * jax.random.normal(ks[6], (F3,), jnp.float32),
        "b_hh":     0.1 * jax.random.normal(ks[7], (F3,), jnp.float32),
    }
    h = jax.random.normal(ks[8], (N, FEATS), jnp.float32)
    # dense (dst, src) adjacency with self loops => every node has >= 1 in-edge
    # (0-in-degree rows would make the edge softmax 0/0 = NaN, as in DGL / the reference).
    adj = (jax.random.uniform(ks[9], (N, N)) < 0.3).astype(jnp.float32)
    adj = jnp.maximum(adj, jnp.eye(N, dtype=jnp.float32))

    ref = recgat_reference(h, adj, params, num_heads=NUM_HEADS, out_feats=FEATS)

    # f32 matmul path; tile_n=32 -> 4-step "parallel" dst-row grid.
    out = recgat_block(h, adj, params, num_heads=NUM_HEADS, out_feats=FEATS,
                       tile_n=32, mm_dtype=jnp.float32)
    out = jax.block_until_ready(out)
    assert out.shape == (N, FEATS)
    assert bool(jnp.all(jnp.isfinite(out)))
    # tolerance loosened slightly vs exact: approx (EUP) reciprocal in the softmax norm
    assert bool(jnp.allclose(out, ref, rtol=5e-3, atol=5e-3)), "f32 mismatch vs reference"

    # bf16 matmul path (same kernel, halves weight DMA / ~3x MXU throughput at scale).
    out_bf16 = recgat_block(h, adj, params, num_heads=NUM_HEADS, out_feats=FEATS,
                            tile_n=32, mm_dtype=jnp.bfloat16)
    out_bf16 = jax.block_until_ready(out_bf16)
    assert bool(jnp.all(jnp.isfinite(out_bf16)))
    assert bool(jnp.allclose(out_bf16, ref, rtol=3e-2, atol=3e-2)), "bf16 mismatch vs reference"

    print("KERNEL_OK")
</pallas_src>

<mosaic_0001>
module attributes {stable_mosaic.version = 11 : i64} {
  func.func @_recgat_kernel(%arg0: i32, %arg1: memref<128x32xf32, #tpu.memory_space<vmem>>, %arg2: memref<32x32xf32, #tpu.memory_space<vmem>>, %arg3: memref<32x128xi8, #tpu.memory_space<vmem>>, %arg4: memref<132x32xf32, #tpu.memory_space<vmem>>, %arg5: memref<32x100xf32, #tpu.memory_space<vmem>>, %arg6: memref<1x128xf32, #tpu.memory_space<vmem>>, %arg7: memref<128x96xf32, #tpu.memory_space<vmem>>, %arg8: memref<1x96xf32, #tpu.memory_space<vmem>>, %arg9: memref<1x96xf32, #tpu.memory_space<vmem>>, %arg10: memref<32x32xf32, #tpu.memory_space<vmem>>) attributes {dimension_semantics = [#tpu.dimension_semantics<parallel>], iteration_bounds = array<i64: 4>, scalar_prefetch = 0 : i64, scratch_operands = 0 : i64, tpu.core_type = #tpu.core_type<tc>, window_params = [{pipeline_mode = #tpu.pipeline_mode<synchronous>, transform_indices = @transform_0, window_bounds = array<i64: 128, 32>}, {transform_indices = @transform_1, window_bounds = array<i64: 32, 32>}, {transform_indices = @transform_2, window_bounds = array<i64: 32, 128>}, {pipeline_mode = #tpu.pipeline_mode<synchronous>, transform_indices = @transform_3, window_bounds = array<i64: 132, 32>}, {pipeline_mode = #tpu.pipeline_mode<synchronous>, transform_indices = @transform_4, window_bounds = array<i64: 32, 100>}, {pipeline_mode = #tpu.pipeline_mode<synchronous>, transform_indices = @transform_5, window_bounds = array<i64: 1, 128>}, {pipeline_mode = #tpu.pipeline_mode<synchronous>, transform_indices = @transform_6, window_bounds = array<i64: 128, 96>}, {pipeline_mode = #tpu.pipeline_mode<synchronous>, transform_indices = @transform_7, window_bounds = array<i64: 1, 96>}, {pipeline_mode = #tpu.pipeline_mode<synchronous>, transform_indices = @transform_8, window_bounds = array<i64: 1, 96>}, {transform_indices = @transform_9, window_bounds = array<i64: 32, 32>}]} {
    %c0 = arith.constant 0 : index
    %c0_0 = arith.constant 0 : index
    %0 = vector.load %arg1[%c0, %c0_0] : memref<128x32xf32, #tpu.memory_space<vmem>>, vector<128x32xf32>
    %c0_1 = arith.constant 0 : index
    %c0_2 = arith.constant 0 : index
    %1 = vector.load %arg2[%c0_1, %c0_2] : memref<32x32xf32, #tpu.memory_space<vmem>>, vector<32x32xf32>
    %c0_3 = arith.constant 0 : index
    %c0_4 = arith.constant 0 : index
    %2 = vector.load %arg3[%c0_3, %c0_4] : memref<32x128xi8, #tpu.memory_space<vmem>>, vector<32x128xi8>
    %3 = arith.extsi %2 : vector<32x128xi8> to vector<32x128xi32>
    %c0_i32 = arith.constant 0 : i32
    %4 = vector.broadcast %c0_i32 : i32 to vector<32x128xi32>
    %5 = arith.cmpi sgt, %3, %4 : vector<32x128xi32>
    %c0_5 = arith.constant 0 : index
    %c0_6 = arith.constant 0 : index
    %6 = vector.load %arg4[%c0_5, %c0_6] : memref<132x32xf32, #tpu.memory_space<vmem>>, vector<132x32xf32>
    %cst = arith.constant dense<0.000000e+00> : vector<132x128xf32>
    %7 = tpu.matmul %6, %0, %cst {dimension_numbers = #tpu.dot_dimension_numbers<[1], [1], [0], [0], [0, 0, 1, 0], [], []>} : vector<132x32xf32>, vector<128x32xf32>, vector<132x128xf32> -> vector<132x128xf32>
    %8 = vector.extract_strided_slice %7 {offsets = [128, 0], sizes = [4, 128], strides = [1, 1]} : vector<132x128xf32> to vector<4x128xf32>
    %c0_7 = arith.constant 0 : index
    %c0_8 = arith.constant 0 : index
    %9 = vector.load %arg5[%c0_7, %c0_8] : memref<32x100xf32, #tpu.memory_space<vmem>>, vector<32x100xf32>
    %cst_9 = arith.constant dense<0.000000e+00> : vector<32x100xf32>
    %10 = tpu.matmul %1, %9, %cst_9 {dimension_numbers = #tpu.dot_dimension_numbers<[1], [0], [0], [1], [0, 0, 1, 1], [], []>} : vector<32x32xf32>, vector<32x100xf32>, vector<32x100xf32> -> vector<32x100xf32>
    %11 = vector.extract_strided_slice %10 {offsets = [0, 0], sizes = [32, 4], strides = [1, 1]} : vector<32x100xf32> to vector<32x4xf32>
    %12 = vector.extract_strided_slice %10 {offsets = [0, 4], sizes = [32, 96], strides = [1, 1]} : vector<32x100xf32> to vector<32x96xf32>
    %c0_10 = arith.constant 0 : index
    %c0_11 = arith.constant 0 : index
    %13 = vector.load %arg9[%c0_10, %c0_11] : memref<1x96xf32, #tpu.memory_space<vmem>>, vector<1x96xf32>
    %14 = vector.broadcast %13 : vector<1x96xf32> to vector<32x96xf32>
    %15 = arith.addf %12, %14 : vector<32x96xf32>
    %16 = vector.extract_strided_slice %11 {offsets = [0, 0], sizes = [32, 1], strides = [1, 1]} : vector<32x4xf32> to vector<32x1xf32>
    %17 = vector.extract_strided_slice %8 {offsets = [0, 0], sizes = [1, 128], strides = [1, 1]} : vector<4x128xf32> to vector<1x128xf32>
    %18 = vector.broadcast %16 : vector<32x1xf32> to vector<32x128xf32>
    %19 = vector.broadcast %17 : vector<1x128xf32> to vector<32x128xf32>
    %20 = arith.addf %18, %19 : vector<32x128xf32>
    %cst_12 = arith.constant 0.000000e+00 : f32
    %21 = vector.broadcast %cst_12 : f32 to vector<32x128xf32>
    %22 = arith.cmpf ogt, %20, %21 : vector<32x128xf32>
    %cst_13 = arith.constant 2.000000e-01 : f32
    %23 = vector.broadcast %cst_13 : f32 to vector<32x128xf32>
    %24 = arith.mulf %23, %20 : vector<32x128xf32>
    %25 = arith.select %22, %20, %24 : vector<32x128xi1>, vector<32x128xf32>
    %cst_14 = arith.constant -1.000000e+30 : f32
    %26 = vector.broadcast %cst_14 : f32 to vector<32x128xf32>
    %27 = arith.select %5, %25, %26 : vector<32x128xi1>, vector<32x128xf32>
    %cst_15 = arith.constant dense<0xFF800000> : vector<32xf32>
    %28 = vector.multi_reduction <maximumf>, %27, %cst_15 [1] : vector<32x128xf32> to vector<32xf32>
    %29 = vector.shape_cast %28 : vector<32xf32> to vector<32x1xf32>
    %30 = vector.broadcast %29 : vector<32x1xf32> to vector<32x128xf32>
    %31 = arith.subf %27, %30 : vector<32x128xf32>
    %32 = math.exp %31 : vector<32x128xf32>
    %cst_16 = arith.constant 0.000000e+00 : f32
    %33 = vector.broadcast %cst_16 : f32 to vector<32x128xf32>
    %34 = arith.select %5, %32, %33 : vector<32x128xi1>, vector<32x128xf32>
    %cst_17 = arith.constant dense<0.000000e+00> : vector<32xf32>
    %35 = vector.multi_reduction <add>, %34, %cst_17 [1] : vector<32x128xf32> to vector<32xf32>
    %36 = vector.shape_cast %35 : vector<32xf32> to vector<32x1xf32>
    %37 = vector.extract_strided_slice %7 {offsets = [0, 0], sizes = [32, 128], strides = [1, 1]} : vector<132x128xf32> to vector<32x128xf32>
    %cst_18 = arith.constant dense<0.000000e+00> : vector<32x32xf32>
    %38 = tpu.matmul %34, %37, %cst_18 {dimension_numbers = #tpu.dot_dimension_numbers<[1], [1], [0], [0], [0, 0, 1, 0], [], []>} : vector<32x128xf32>, vector<32x128xf32>, vector<32x32xf32> -> vector<32x32xf32>
    %39 = tpu.reciprocal %36 {approx = true} : vector<32x1xf32> -> vector<32x1xf32>
    %40 = vector.broadcast %39 : vector<32x1xf32> to vector<32x32xf32>
    %41 = arith.mulf %38, %40 : vector<32x32xf32>
    %42 = vector.extract_strided_slice %11 {offsets = [0, 1], sizes = [32, 1], strides = [1, 1]} : vector<32x4xf32> to vector<32x1xf32>
    %43 = vector.extract_strided_slice %8 {offsets = [1, 0], sizes = [1, 128], strides = [1, 1]} : vector<4x128xf32> to vector<1x128xf32>
    %44 = vector.broadcast %42 : vector<32x1xf32> to vector<32x128xf32>
    %45 = vector.broadcast %43 : vector<1x128xf32> to vector<32x128xf32>
    %46 = arith.addf %44, %45 : vector<32x128xf32>
    %cst_19 = arith.constant 0.000000e+00 : f32
    %47 = vector.broadcast %cst_19 : f32 to vector<32x128xf32>
    %48 = arith.cmpf ogt, %46, %47 : vector<32x128xf32>
    %cst_20 = arith.constant 2.000000e-01 : f32
    %49 = vector.broadcast %cst_20 : f32 to vector<32x128xf32>
    %50 = arith.mulf %49, %46 : vector<32x128xf32>
    %51 = arith.select %48, %46, %50 : vector<32x128xi1>, vector<32x128xf32>
    %cst_21 = arith.constant -1.000000e+30 : f32
    %52 = vector.broadcast %cst_21 : f32 to vector<32x128xf32>
    %53 = arith.select %5, %51, %52 : vector<32x128xi1>, vector<32x128xf32>
    %cst_22 = arith.constant dense<0xFF800000> : vector<32xf32>
    %54 = vector.multi_reduction <maximumf>, %53, %cst_22 [1] : vector<32x128xf32> to vector<32xf32>
    %55 = vector.shape_cast %54 : vector<32xf32> to vector<32x1xf32>
    %56 = vector.broadcast %55 : vector<32x1xf32> to vector<32x128xf32>
    %57 = arith.subf %53, %56 : vector<32x128xf32>
    %58 = math.exp %57 : vector<32x128xf32>
    %cst_23 = arith.constant 0.000000e+00 : f32
    %59 = vector.broadcast %cst_23 : f32 to vector<32x128xf32>
    %60 = arith.select %5, %58, %59 : vector<32x128xi1>, vector<32x128xf32>
    %cst_24 = arith.constant dense<0.000000e+00> : vector<32xf32>
    %61 = vector.multi_reduction <add>, %60, %cst_24 [1] : vector<32x128xf32> to vector<32xf32>
    %62 = vector.shape_cast %61 : vector<32xf32> to vector<32x1xf32>
    %63 = vector.extract_strided_slice %7 {offsets = [32, 0], sizes = [32, 128], strides = [1, 1]} : vector<132x128xf32> to vector<32x128xf32>
    %cst_25 = arith.constant dense<0.000000e+00> : vector<32x32xf32>
    %64 = tpu.matmul %60, %63, %cst_25 {dimension_numbers = #tpu.dot_dimension_numbers<[1], [1], [0], [0], [0, 0, 1, 0], [], []>} : vector<32x128xf32>, vector<32x128xf32>, vector<32x32xf32> -> vector<32x32xf32>
    %65 = tpu.reciprocal %62 {approx = true} : vector<32x1xf32> -> vector<32x1xf32>
    %66 = vector.broadcast %65 : vector<32x1xf32> to vector<32x32xf32>
    %67 = arith.mulf %64, %66 : vector<32x32xf32>
    %68 = vector.extract_strided_slice %11 {offsets = [0, 2], sizes = [32, 1], strides = [1, 1]} : vector<32x4xf32> to vector<32x1xf32>
    %69 = vector.extract_strided_slice %8 {offsets = [2, 0], sizes = [1, 128], strides = [1, 1]} : vector<4x128xf32> to vector<1x128xf32>
    %70 = vector.broadcast %68 : vector<32x1xf32> to vector<32x128xf32>
    %71 = vector.broadcast %69 : vector<1x128xf32> to vector<32x128xf32>
    %72 = arith.addf %70, %71 : vector<32x128xf32>
    %cst_26 = arith.constant 0.000000e+00 : f32
    %73 = vector.broadcast %cst_26 : f32 to vector<32x128xf32>
    %74 = arith.cmpf ogt, %72, %73 : vector<32x128xf32>
    %cst_27 = arith.constant 2.000000e-01 : f32
    %75 = vector.broadcast %cst_27 : f32 to vector<32x128xf32>
    %76 = arith.mulf %75, %72 : vector<32x128xf32>
    %77 = arith.select %74, %72, %76 : vector<32x128xi1>, vector<32x128xf32>
    %cst_28 = arith.constant -1.000000e+30 : f32
    %78 = vector.broadcast %cst_28 : f32 to vector<32x128xf32>
    %79 = arith.select %5, %77, %78 : vector<32x128xi1>, vector<32x128xf32>
    %cst_29 = arith.constant dense<0xFF800000> : vector<32xf32>
    %80 = vector.multi_reduction <maximumf>, %79, %cst_29 [1] : vector<32x128xf32> to vector<32xf32>
    %81 = vector.shape_cast %80 : vector<32xf32> to vector<32x1xf32>
    %82 = vector.broadcast %81 : vector<32x1xf32> to vector<32x128xf32>
    %83 = arith.subf %79, %82 : vector<32x128xf32>
    %84 = math.exp %83 : vector<32x128xf32>
    %cst_30 = arith.constant 0.000000e+00 : f32
    %85 = vector.broadcast %cst_30 : f32 to vector<32x128xf32>
    %86 = arith.select %5, %84, %85 : vector<32x128xi1>, vector<32x128xf32>
    %cst_31 = arith.constant dense<0.000000e+00> : vector<32xf32>
    %87 = vector.multi_reduction <add>, %86, %cst_31 [1] : vector<32x128xf32> to vector<32xf32>
    %88 = vector.shape_cast %87 : vector<32xf32> to vector<32x1xf32>
    %89 = vector.extract_strided_slice %7 {offsets = [64, 0], sizes = [32, 128], strides = [1, 1]} : vector<132x128xf32> to vector<32x128xf32>
    %cst_32 = arith.constant dense<0.000000e+00> : vector<32x32xf32>
    %90 = tpu.matmul %86, %89, %cst_32 {dimension_numbers = #tpu.dot_dimension_numbers<[1], [1], [0], [0], [0, 0, 1, 0], [], []>} : vector<32x128xf32>, vector<32x128xf32>, vector<32x32xf32> -> vector<32x32xf32>
    %91 = tpu.reciprocal %88 {approx = true} : vector<32x1xf32> -> vector<32x1xf32>
    %92 = vector.broadcast %91 : vector<32x1xf32> to vector<32x32xf32>
    %93 = arith.mulf %90, %92 : vector<32x32xf32>
    %94 = vector.extract_strided_slice %11 {offsets = [0, 3], sizes = [32, 1], strides = [1, 1]} : vector<32x4xf32> to vector<32x1xf32>
    %95 = vector.extract_strided_slice %8 {offsets = [3, 0], sizes = [1, 128], strides = [1, 1]} : vector<4x128xf32> to vector<1x128xf32>
    %96 = vector.broadcast %94 : vector<32x1xf32> to vector<32x128xf32>
    %97 = vector.broadcast %95 : vector<1x128xf32> to vector<32x128xf32>
    %98 = arith.addf %96, %97 : vector<32x128xf32>
    %cst_33 = arith.constant 0.000000e+00 : f32
    %99 = vector.broadcast %cst_33 : f32 to vector<32x128xf32>
    %100 = arith.cmpf ogt, %98, %99 : vector<32x128xf32>
    %cst_34 = arith.constant 2.000000e-01 : f32
    %101 = vector.broadcast %cst_34 : f32 to vector<32x128xf32>
    %102 = arith.mulf %101, %98 : vector<32x128xf32>
    %103 = arith.select %100, %98, %102 : vector<32x128xi1>, vector<32x128xf32>
    %cst_35 = arith.constant -1.000000e+30 : f32
    %104 = vector.broadcast %cst_35 : f32 to vector<32x128xf32>
    %105 = arith.select %5, %103, %104 : vector<32x128xi1>, vector<32x128xf32>
    %cst_36 = arith.constant dense<0xFF800000> : vector<32xf32>
    %106 = vector.multi_reduction <maximumf>, %105, %cst_36 [1] : vector<32x128xf32> to vector<32xf32>
    %107 = vector.shape_cast %106 : vector<32xf32> to vector<32x1xf32>
    %108 = vector.broadcast %107 : vector<32x1xf32> to vector<32x128xf32>
    %109 = arith.subf %105, %108 : vector<32x128xf32>
    %110 = math.exp %109 : vector<32x128xf32>
    %cst_37 = arith.constant 0.000000e+00 : f32
    %111 = vector.broadcast %cst_37 : f32 to vector<32x128xf32>
    %112 = arith.select %5, %110, %111 : vector<32x128xi1>, vector<32x128xf32>
    %cst_38 = arith.constant dense<0.000000e+00> : vector<32xf32>
    %113 = vector.multi_reduction <add>, %112, %cst_38 [1] : vector<32x128xf32> to vector<32xf32>
    %114 = vector.shape_cast %113 : vector<32xf32> to vector<32x1xf32>
    %115 = vector.extract_strided_slice %7 {offsets = [96, 0], sizes = [32, 128], strides = [1, 1]} : vector<132x128xf32> to vector<32x128xf32>
    %cst_39 = arith.constant dense<0.000000e+00> : vector<32x32xf32>
    %116 = tpu.matmul %112, %115, %cst_39 {dimension_numbers = #tpu.dot_dimension_numbers<[1], [1], [0], [0], [0, 0, 1, 0], [], []>} : vector<32x128xf32>, vector<32x128xf32>, vector<32x32xf32> -> vector<32x32xf32>
    %117 = tpu.reciprocal %114 {approx = true} : vector<32x1xf32> -> vector<32x1xf32>
    %118 = vector.broadcast %117 : vector<32x1xf32> to vector<32x32xf32>
    %119 = arith.mulf %116, %118 : vector<32x32xf32>
    %120 = tpu.concatenate %41, %67, %93, %119 in 1 : vector<32x32xf32>, vector<32x32xf32>, vector<32x32xf32>, vector<32x32xf32> -> vector<32x128xf32>
    %c0_40 = arith.constant 0 : index
    %c0_41 = arith.constant 0 : index
    %121 = vector.load %arg6[%c0_40, %c0_41] : memref<1x128xf32, #tpu.memory_space<vmem>>, vector<1x128xf32>
    %122 = vector.broadcast %121 : vector<1x128xf32> to vector<32x128xf32>
    %123 = arith.addf %120, %122 : vector<32x128xf32>
    %c0_42 = arith.constant 0 : index
    %c0_43 = arith.constant 0 : index
    %124 = vector.load %arg7[%c0_42, %c0_43] : memref<128x96xf32, #tpu.memory_space<vmem>>, vector<128x96xf32>
    %cst_44 = arith.constant dense<0.000000e+00> : vector<32x96xf32>
    %125 = tpu.matmul %123, %124, %cst_44 {dimension_numbers = #tpu.dot_dimension_numbers<[1], [0], [0], [1], [0, 0, 1, 1], [], []>} : vector<32x128xf32>, vector<128x96xf32>, vector<32x96xf32> -> vector<32x96xf32>
    %c0_45 = arith.constant 0 : index
    %c0_46 = arith.constant 0 : index
    %126 = vector.load %arg8[%c0_45, %c0_46] : memref<1x96xf32, #tpu.memory_space<vmem>>, vector<1x96xf32>
    %127 = vector.broadcast %126 : vector<1x96xf32> to vector<32x96xf32>
    %128 = arith.addf %125, %127 : vector<32x96xf32>
    %129 = vector.extract_strided_slice %128 {offsets = [0, 0], sizes = [32, 32], strides = [1, 1]} : vector<32x96xf32> to vector<32x32xf32>
    %130 = vector.extract_strided_slice %15 {offsets = [0, 0], sizes = [32, 32], strides = [1, 1]} : vector<32x96xf32> to vector<32x32xf32>
    %131 = arith.addf %129, %130 : vector<32x32xf32>
    %132 = arith.negf %131 : vector<32x32xf32>
    %133 = math.exp %132 : vector<32x32xf32>
    %cst_47 = arith.constant 1.000000e+00 : f32
    %134 = vector.broadcast %cst_47 : f32 to vector<32x32xf32>
    %135 = arith.addf %134, %133 : vector<32x32xf32>
    %136 = arith.divf %134, %135 : vector<32x32xf32>
    %137 = vector.extract_strided_slice %128 {offsets = [0, 32], sizes = [32, 32], strides = [1, 1]} : vector<32x96xf32> to vector<32x32xf32>
    %138 = vector.extract_strided_slice %15 {offsets = [0, 32], sizes = [32, 32], strides = [1, 1]} : vector<32x96xf32> to vector<32x32xf32>
    %139 = arith.addf %137, %138 : vector<32x32xf32>
    %140 = arith.negf %139 : vector<32x32xf32>
    %141 = math.exp %140 : vector<32x32xf32>
    %cst_48 = arith.constant 1.000000e+00 : f32
    %142 = vector.broadcast %cst_48 : f32 to vector<32x32xf32>
    %143 = arith.addf %142, %141 : vector<32x32xf32>
    %144 = arith.divf %142, %143 : vector<32x32xf32>
    %145 = vector.extract_strided_slice %128 {offsets = [0, 64], sizes = [32, 32], strides = [1, 1]} : vector<32x96xf32> to vector<32x32xf32>
    %146 = vector.extract_strided_slice %15 {offsets = [0, 64], sizes = [32, 32], strides = [1, 1]} : vector<32x96xf32> to vector<32x32xf32>
    %147 = arith.mulf %136, %146 : vector<32x32xf32>
    %148 = arith.addf %145, %147 : vector<32x32xf32>
    %149 = math.tanh %148 : vector<32x32xf32>
    %cst_49 = arith.constant 1.000000e+00 : f32
    %150 = vector.broadcast %cst_49 : f32 to vector<32x32xf32>
    %151 = arith.subf %150, %144 : vector<32x32xf32>
    %152 = arith.mulf %151, %149 : vector<32x32xf32>
    %153 = arith.mulf %144, %1 : vector<32x32xf32>
    %154 = arith.addf %152, %153 : vector<32x32xf32>
    %cst_50 = arith.constant 0.000000e+00 : f32
    %155 = vector.broadcast %cst_50 : f32 to vector<32x32xf32>
    %156 = arith.cmpf ogt, %154, %155 : vector<32x32xf32>
    %cst_51 = arith.constant 0.000000e+00 : f32
    %157 = vector.broadcast %cst_51 : f32 to vector<32x32xf32>
    %158 = arith.minimumf %154, %157 : vector<32x32xf32>
    %159 = math.exp %158 : vector<32x32xf32>
    %cst_52 = arith.constant 1.000000e+00 : f32
    %160 = vector.broadcast %cst_52 : f32 to vector<32x32xf32>
    %161 = arith.subf %159, %160 : vector<32x32xf32>
    %162 = arith.select %156, %154, %161 : vector<32x32xi1>, vector<32x32xf32>
    %c0_53 = arith.constant 0 : index
    %c0_54 = arith.constant 0 : index
    %163 = vector.load %arg10[%c0_53, %c0_54] : memref<32x32xf32, #tpu.memory_space<vmem>>, vector<32x32xf32>
    tpu.vector_store %arg10[%c0_53, %c0_54], %162 {strides = array<i32>} : memref<32x32xf32, #tpu.memory_space<vmem>>, vector<32x32xf32>,
    return
  }
  func.func @transform_0(%arg0: i32) -> (i32, i32) {
    %c0_i32 = arith.constant 0 : i32
    %c0_i32_0 = arith.constant 0 : i32
    %c0_i32_1 = arith.constant 0 : i32
    return %c0_i32, %c0_i32_0 : i32, i32
  }
  func.func @transform_1(%arg0: i32) -> (i32, i32) {
    %c0_i32 = arith.constant 0 : i32
    %c0_i32_0 = arith.constant 0 : i32
    return %arg0, %c0_i32 : i32, i32
  }
  func.func @transform_2(%arg0: i32) -> (i32, i32) {
    %c0_i32 = arith.constant 0 : i32
    %c0_i32_0 = arith.constant 0 : i32
    return %arg0, %c0_i32 : i32, i32
  }
  func.func @transform_3(%arg0: i32) -> (i32, i32) {
    %c0_i32 = arith.constant 0 : i32
    %c0_i32_0 = arith.constant 0 : i32
    %c0_i32_1 = arith.constant 0 : i32
    return %c0_i32, %c0_i32_0 : i32, i32
  }
  func.func @transform_4(%arg0: i32) -> (i32, i32) {
    %c0_i32 = arith.constant 0 : i32
    %c0_i32_0 = arith.constant 0 : i32
    %c0_i32_1 = arith.constant 0 : i32
    return %c0_i32, %c0_i32_0 : i32, i32
  }
  func.func @transform_5(%arg0: i32) -> (i32, i32) {
    %c0_i32 = arith.constant 0 : i32
    %c0_i32_0 = arith.constant 0 : i32
    %c0_i32_1 = arith.constant 0 : i32
    return %c0_i32, %c0_i32_0 : i32, i32
  }
  func.func @transform_6(%arg0: i32) -> (i32, i32) {
    %c0_i32 = arith.constant 0 : i32
    %c0_i32_0 = arith.constant 0 : i32
    %c0_i32_1 = arith.constant 0 : i32
    return %c0_i32, %c0_i32_0 : i32, i32
  }
  func.func @transform_7(%arg0: i32) -> (i32, i32) {
    %c0_i32 = arith.constant 0 : i32
    %c0_i32_0 = arith.constant 0 : i32
    %c0_i32_1 = arith.constant 0 : i32
    return %c0_i32, %c0_i32_0 : i32, i32
  }
  func.func @transform_8(%arg0: i32) -> (i32, i32) {
    %c0_i32 = arith.constant 0 : i32
    %c0_i32_0 = arith.constant 0 : i32
    %c0_i32_1 = arith.constant 0 : i32
    return %c0_i32, %c0_i32_0 : i32, i32
  }
  func.func @transform_9(%arg0: i32) -> (i32, i32) {
    %c0_i32 = arith.constant 0 : i32
    %c0_i32_0 = arith.constant 0 : i32
    return %arg0, %c0_i32 : i32, i32
  }
}

</mosaic_0001>

<bundles_post_ra>
// kernel: tpu_custom_call.1
= control target key start
LH: loop header
LB: loop body
LE: loop exit
PB: predicated region body
PF: predicated region fallthrough
CT: control target
= control target key end

     0   :  { %s2512_s30 = smov 0   ;;  %s3117_s0 = inlined_call_operand.vmem [shape: f32[128,32], index: 0, kind: input, shape index: {}]   ;;  %s3118_s1 = inlined_call_operand.vmem [shape: f32[128,32], index: 1, kind: input, shape index: {}]   ;;  %s3119_s2 = inlined_call_operand.vmem [shape: s8[128,128], index: 2, kind: input, shape index: {}]   ;;  %s3120_s3 = inlined_call_operand.vmem [shape: f32[132,32], index: 3, kind: input, shape index: {}]   ;;  %s3121_s4 = inlined_call_operand.vmem [shape: f32[32,100], index: 4, kind: input, shape index: {}]   ;;  %s3122_s5 = inlined_call_operand.vmem [shape: f32[1,128], index: 5, kind: input, shape index: {}]   ;;  %s3123_s6 = inlined_call_operand.vmem [shape: f32[128,96], index: 6, kind: input, shape index: {}]   ;;  %s3124_s7 = inlined_call_operand.vmem [shape: f32[1,96], index: 7, kind: input, shape index: {}]   ;;  %s3125_s8 = inlined_call_operand.vmem [shape: f32[1,96], index: 8, kind: input, shape index: {}]   ;;  %s3126_s9 = inlined_call_operand.vmem [shape: f32[128,32], index: 9, kind: output, shape index: {}]  }
   0x1 LB: > { %s2518_s10 = sadd.s32 4294967295, %s2447_s30   ;;  %p1852_p0 = scmp.ge.s32.totalorder %s2447_s30, 1  ;;  %s2447_s30 = sphi %s2512_s30, %s19_s30  }
   0x2   : > { %p297_p1 = scmp.lt.s32.totalorder %s2447_s30, 5 }
   0x4   : > { %p298_p2 = pnand %p1852_p0, %p297_p1 }
   0x5   : > { %v649_v0 = vld [vmem:[%s3121_s4] sm:$0xff] (!%p298_p2)  ;;  %v650_v1 = vld [vmem:[%s3121_s4 + $0x8] sm:$0xff] (!%p298_p2)  ;;  %v651_v2 = vld [vmem:[%s3121_s4 + $0x10] sm:$0xff] (!%p298_p2)  ;;  %vm399_vm0 = vcmask (!%p298_p2), 261120   ;;  %s1853_s17 = sshll.u32 (!%p298_p2), %s2518_s10, 2  ;;  %v2449_v5 = vmov (!%p298_p2), 0.0|0.0  }
   0x6   : > { %301 = sbr.rel (%p298_p2) target bundleno = 1542 (0x606), region = 56  ;;  %v2240_v3 = vpack.c.bf16 (!%p298_p2), %v650_v1, %v649_v0  ;;  %v652_v4 = vld [vmem:[%s3121_s4 + $0x18] sm:$0xff] (!%p298_p2)  ;;  %2208 = vmatprep.subr.bf16.mxu0 (!%p298_p2), %v2449_v5  ;;  %v353_v6 = vld [vmem:[%s3117_s0] sm:$0xff] (!%p298_p2)  ;;  %v354_v7 = vld [vmem:[%s3117_s0 + $0x8] sm:$0xff] (!%p298_p2)  ;;  %p338_p3 = scmp.lt.s32.totalorder (!%p298_p2), %s1853_s17, 15  ;;  %vm2450_vm2 = vmmov (!%p298_p2), 0  }
   0x7   : > { %v2244_v8 = vpack.c.bf16 (!%p298_p2), %v652_v4, %v651_v2  ;;  %v2209_v9 = vpack.c.bf16 (!%p298_p2), %v354_v7, %v353_v6  ;;  %vm2543_vm1 = vmpackc.low (!%p298_p2), %vm399_vm0, %vm399_vm0  ;;  %v2451_v11 = vmov (!%p298_p2), 0.0   ;;  %v355_v12 = vld [vmem:[%s3117_s0 + $0x10] sm:$0xff] (!%p298_p2)  ;;  %v356_v13 = vld [vmem:[%s3117_s0 + $0x18] sm:$0xff] (!%p298_p2)  ;;  %v2452_v14 = vmov (!%p298_p2), 0   ;;  %p343_p4 = scmp.lt.s32.totalorder (!%p298_p2), %s2518_s10, 3  ;;  %s2456_s23 = smov (!%p298_p2), 32  }
   0x8   : > { %2049 = vmatprep.mubr.msk.f32.mxu0 (!%p298_p2), %vm2450_vm2, %v2451_v11  ;;  %2241 = vmatprep.subr.bf16.mxu1 (!%p298_p2), %v2240_v3  ;;  %v2213_v17 = vpack.c.bf16 (!%p298_p2), %v356_v13, %v355_v12  ;;  %v357_v20 = vld [vmem:[%s3117_s0 + $0x20] sm:$0xff] (!%p298_p2)  ;;  %v358_v21 = vld [vmem:[%s3117_s0 + $0x28] sm:$0xff] (!%p298_p2)  ;;  %v359_v23 = vld [vmem:[%s3117_s0 + $0x30] sm:$0xff] (!%p298_p2)  ;;  %v2453_v59 = vmov (!%p298_p2), 1   ;;  %v2454_v60 = vmov (!%p298_p2), 2   ;;  %v2455_v61 = vmov (!%p298_p2), 3  }
   0x9   : > { %2243 = vmatpush3.bf16.msra.mxu1 (!%p298_p2), %v2240_v3  ;;  %2211 = vmatpush3.bf16.xpose.msk.msra.mxu0 (!%p298_p2), %vm2543_vm1, %v2209_v9  ;;  %v2217_v22 = vpack.c.bf16 (!%p298_p2), %v358_v21, %v357_v20  ;;  %v360_v24 = vld [vmem:[%s3117_s0 + $0x38] sm:$0xff] (!%p298_p2)  ;;  %v361_v26 = vld [vmem:[%s3117_s0 + $0x40] sm:$0xff] (!%p298_p2)  ;;  %v362_v27 = vld [vmem:[%s3117_s0 + $0x48] sm:$0xff] (!%p298_p2)  ;;  %s2458_s29 = smov (!%p298_p2), 96   ;;  %s2459_s14 = smov (!%p298_p2), 4  }
   0xa   : > { %2245 = vmatprep.subr.bf16.mxu1 (!%p298_p2), %v2244_v8  ;;  %2212 = vmatprep.subr.bf16.mxu0 (!%p298_p2), %v2449_v5  ;;  %v2221_v25 = vpack.c.bf16 (!%p298_p2), %v360_v24, %v359_v23  ;;  %v2225_v28 = vpack.c.bf16 (!%p298_p2), %v362_v27, %v361_v26  ;;  %v363_v29 = vld [vmem:[%s3117_s0 + $0x50] sm:$0xff] (!%p298_p2)  ;;  %v364_v30 = vld [vmem:[%s3117_s0 + $0x58] sm:$0xff] (!%p298_p2)  ;;  %v365_v32 = vld [vmem:[%s3117_s0 + $0x60] sm:$0xff] (!%p298_p2)  ;;  %s2460_s18 = smov (!%p298_p2), 124   ;;  %s2461_s19 = smov (!%p298_p2), 60  }
   0xb   : > { %2333 = vset.pattern.permute.xlu0 (!%p298_p2), %v2452_v14  ;;  %2334 = vset.pattern.permute.xlu1 (!%p298_p2), %v2452_v14  ;;  %v2229_v31 = vpack.c.bf16 (!%p298_p2), %v364_v30, %v363_v29  ;;  %v366_v33 = vld [vmem:[%s3117_s0 + $0x68] sm:$0xff] (!%p298_p2)  ;;  %v367_v35 = vld [vmem:[%s3117_s0 + $0x70] sm:$0xff] (!%p298_p2)  ;;  %v368_v36 = vld [vmem:[%s3117_s0 + $0x78] sm:$0xff] (!%p298_p2) }
   0xc   : > { %v2233_v34 = vpack.c.bf16 (!%p298_p2), %v366_v33, %v365_v32  ;;  %v2237_v37 = vpack.c.bf16 (!%p298_p2), %v368_v36, %v367_v35  ;;  %v382_v38 = vld [vmem:[%s3120_s3] sm:$0xff] (!%p298_p2)  ;;  %v383_v39 = vld [vmem:[%s3120_s3 + $0x8] sm:$0xff] (!%p298_p2)  ;;  %v384_v40 = vld [vmem:[%s3120_s3 + $0x10] sm:$0xff] (!%p298_p2)  ;;  %v783_v35 = vlaneseq (!%p298_p2) }
   0xd   : > { %s3138_s17 = smov (!%p338_p3, %s1853_s17), 15  ;;  %2247 = vmatpush3.bf16.msra.mxu1 %v2244_v8  ;;  %v385_v41 = vld [vmem:[%s3120_s3 + $0x18] sm:$0xff]  ;;  %v386_v42 = vld [vmem:[%s3120_s3 + $0x20] sm:$0xff]  ;;  %v387_v43 = vld [vmem:[%s3120_s3 + $0x28] sm:$0xff]  ;;  %s3140_s10 = smov (!%p343_p4, %s2518_s10), 3 }
   0xe   : > { %s1854_s24 = sshll.u32 %s3138_s17, 3  ;;  %v388_v44 = vld [vmem:[%s3120_s3 + $0x30] sm:$0xff]  ;;  %v389_v45 = vld [vmem:[%s3120_s3 + $0x38] sm:$0xff]  ;;  %v390_v46 = vld [vmem:[%s3120_s3 + $0x40] sm:$0xff]  ;;  %s1855_s25 = sshll.u32 %s3140_s10, 3 }
   0xf   : > { %s2565_s12 = scalar_lea.vmem %s3118_s1, %s1854_s24  ;;  %v391_v47 = vld [vmem:[%s3120_s3 + $0x48] sm:$0xff]  ;;  %v392_v48 = vld [vmem:[%s3120_s3 + $0x50] sm:$0xff]  ;;  %v393_v49 = vld [vmem:[%s3120_s3 + $0x58] sm:$0xff]  ;;  %s346_s28 = scalar_lea.vmem %s3119_s2, %s1855_s25 }
  0x10   : > { %v369_v15 = vld [vmem:[%s2565_s12] sm:$0xff]  ;;  %v370_v16 = vld [vmem:[%s2565_s12 + $0x8] sm:$0xff]  ;;  %v371_v18 = vld [vmem:[%s2565_s12 + $0x10] sm:$0xff]  ;;  %s2457_s25 = smov 64   ;;  %s351_s22 = scalar_lea.vmem %s3126_s9, %s1854_s24 }
  0x11   : > { %2108 = vmatprep.mubr.msk.f32.mxu1 %vm399_vm0, %v369_v15  ;;  %v372_v19 = vld [vmem:[%s2565_s12 + $0x18] sm:$0xff]  ;;  %2215 = vmatpush3.bf16.xpose.msk.msra.mxu0 %vm2543_vm1, %v2213_v17  ;;  %v394_v50 = vld [vmem:[%s3120_s3 + $0x60] sm:$0xff]  ;;  %v395_v51 = vld [vmem:[%s3120_s3 + $0x68] sm:$0xff] }
  0x12   : > { %2109 = vmatmul.mubr.msk.f32.vlgmr.msra.gmra.mrb[0].mxu1 %vm399_vm0, %v370_v16  ;;  %2216 = vmatprep.subr.bf16.mxu0 %v2449_v5  ;;  %v396_v52 = vld [vmem:[%s3120_s3 + $0x70] sm:$0xff]  ;;  %v397_v53 = vld [vmem:[%s3120_s3 + $0x78] sm:$0xff]  ;;  %v398_v54 = vld [vmem:[%s3120_s3 + $0x80] sm:$0xf] }
  0x13   : > { %2111 = vmatprep.mubr.msk.f32.mxu1 %vm399_vm0, %v371_v18 }
  0x16   : > { %2112 = vmatmul.mubr.msk.f32.gmra.mrb[2].mxu1 %vm399_vm0, %v372_v19 }
  0x19   : > { %2219 = vmatpush3.bf16.xpose.msk.msra.mxu0 %vm2543_vm1, %v2217_v22 }
  0x1a   : > { %2220 = vmatprep.subr.bf16.mxu0 %v2449_v5 }
  0x21   : > { %2223 = vmatpush3.bf16.xpose.msk.msra.mxu0 %vm2543_vm1, %v2221_v25 }
  0x22   : > { %2224 = vmatprep.subr.bf16.mxu0 %v2449_v5 }
  0x29   : > { %2227 = vmatpush3.bf16.xpose.msk.msra.mxu0 %vm2543_vm1, %v2225_v28 }
  0x2a   : > { %2228 = vmatprep.subr.bf16.mxu0 %v2449_v5 }
  0x31   : > { %2231 = vmatpush3.bf16.xpose.msk.msra.mxu0 %vm2543_vm1, %v2229_v31 }
  0x32   : > { %2232 = vmatprep.subr.bf16.mxu0 %v2449_v5 }
  0x39   : > { %2235 = vmatpush3.bf16.xpose.msk.msra.mxu0 %vm2543_vm1, %v2233_v34 }
  0x3a   : > { %2236 = vmatprep.subr.bf16.mxu0 %v2449_v5 }
  0x41   : > { %2239 = vmatpush3.bf16.xpose.msk.msra.mxu0 %vm2543_vm1, %v2237_v37 }
  0x48   : > { %2050 = vmatmul.mubr.msk.f32.vlgmr.msra.gmra.mrb[0].mxu0 %vm399_vm0, %v382_v38 }
  0x49   : > { %2052 = vmatprep.mubr.msk.f32.mxu0 %vm2450_vm2, %v2451_v11 }
  0x4c   : > { %2053 = vmatmul.mubr.msk.f32.gmra.mrb[2].mxu0 %vm399_vm0, %v383_v39  ;;  %v2764_v39 = vshrl.u32 %v783_v35, 7 }
  0x4d   : > { %2055 = vmatprep.mubr.msk.f32.mxu0 %vm2450_vm2, %v2451_v11 }
  0x50   : > { %2056 = vmatmul.mubr.msk.f32.gmra.mrb[4].mxu0 %vm399_vm0, %v384_v40 }
  0x51   : > { %2058 = vmatprep.mubr.msk.f32.mxu0 %vm2450_vm2, %v2451_v11 }
  0x54   : > { %2059 = vmatmul.mubr.msk.f32.gmra.mrb[6].mxu0 %vm399_vm0, %v385_v41  ;;  %v785_v41 = vsub.s32 0, %v2764_v39 }
  0x55   : > { %2061 = vmatprep.mubr.msk.f32.mxu0 %vm2450_vm2, %v2451_v11 }
  0x58   : > { %2062 = vmatmul.mubr.msk.f32.gmra.mrb[8].mxu0 %vm399_vm0, %v386_v42 }
  0x59   : > { %2064 = vmatprep.mubr.msk.f32.mxu0 %vm2450_vm2, %v2451_v11 }
  0x5c   : > { %2065 = vmatmul.mubr.msk.f32.gmra.mrb[10].mxu0 %vm399_vm0, %v387_v43  ;;  %v373_v43 = vld [vmem:[%s346_s28] sm:$0xff] }
  0x5d   : > { %2067 = vmatprep.mubr.msk.f32.mxu0 %vm2450_vm2, %v2451_v11 }
  0x60   : > { %2068 = vmatmul.mubr.msk.f32.gmra.mrb[12].mxu0 %vm399_vm0, %v388_v44 }
  0x61   : > { %2070 = vmatprep.mubr.msk.f32.mxu0 %vm2450_vm2, %v2451_v11 }
  0x64   : > { %2071 = vmatmul.mubr.msk.f32.gmra.mrb[14].mxu0 %vm399_vm0, %v389_v45  ;;  %v375_v45 = vunpack.c.1.s8 %v373_v43 }
  0x65   : > { %2073 = vmatprep.mubr.msk.f32.mxu0 %vm2450_vm2, %v2451_v11 }
  0x66   : > { %vm2773_vm3 = vcmp.gt.s32.totalorder %v375_v45, 0 }
  0x68   : > { %2074 = vmatmul.mubr.msk.f32.gmra.mrb[16].mxu0 %vm399_vm0, %v390_v46 }
  0x69   : > { %2076 = vmatprep.mubr.msk.f32.mxu0 %vm2450_vm2, %v2451_v11 }
  0x6c   : > { %2077 = vmatmul.mubr.msk.f32.gmra.mrb[18].mxu0 %vm399_vm0, %v391_v47 }
  0x6d   : > { %2079 = vmatprep.mubr.msk.f32.mxu0 %vm2450_vm2, %v2451_v11 }
  0x70   : > { %2080 = vmatmul.mubr.msk.f32.gmra.mrb[20].mxu0 %vm399_vm0, %v392_v48 }
  0x71   : > { %2082 = vmatprep.mubr.msk.f32.mxu0 %vm2450_vm2, %v2451_v11 }
  0x74   : > { %2083 = vmatmul.mubr.msk.f32.gmra.mrb[22].mxu0 %vm399_vm0, %v393_v49 }
  0x75   : > { %2085 = vmatprep.mubr.msk.f32.mxu0 %vm2450_vm2, %v2451_v11 }
  0x78   : > { %2086 = vmatmul.mubr.msk.f32.gmra.mrb[24].mxu0 %vm399_vm0, %v394_v50  ;;  %v374_v50 = vunpack.c.0.s8 %v373_v43 }
  0x79   : > { %2088 = vmatprep.mubr.msk.f32.mxu0 %vm2450_vm2, %v2451_v11 }
  0x7a   : > { %vm2783_vm5 = vcmp.gt.s32.totalorder %v374_v50, 0 }
  0x7c   : > { %2089 = vmatmul.mubr.msk.f32.gmra.mrb[26].mxu0 %vm399_vm0, %v395_v51  ;;  %v950_v51 = vsub.s32 1, %v2764_v39 }
  0x7d   : > { %2091 = vmatprep.mubr.msk.f32.mxu0 %vm2450_vm2, %v2451_v11 }
  0x80   : > { %2092 = vmatmul.mubr.msk.f32.gmra.mrb[28].mxu0 %vm399_vm0, %v396_v52 }
  0x81   : > { %2094 = vmatprep.mubr.msk.f32.mxu0 %vm2450_vm2, %v2451_v11 }
  0x84   : > { %2095 = vmatmul.mubr.msk.f32.gmra.mrb[30].mxu0 %vm399_vm0, %v397_v53  ;;  %v376_v53 = vunpack.c.2.s8 %v373_v43 }
  0x85   : > { %2097 = vmatprep.mubr.msk.f32.mxu0 %vm2450_vm2, %v2451_v11 }
  0x86   : > { %vm2788_vm7 = vcmp.gt.s32.totalorder %v376_v53, 0 }
  0x88   : > { %2098 = vmatmul.mubr.msk.f32.gmra.mrb[32].mxu0 %vm399_vm0, %v398_v54 }
  0xe5   : > { %v2725_v55 = vpop.f32.mrb[0].mxu1 }
  0xe6   : > { %770 = vperm.xlu0 %2333, %v2725_v55   ;;  %v2728_v56 = vpop.f32.mrb[1].mxu1 }
  0xe9   : > { %v2730_v57 = vpop.f32.mrb[2].mxu1 }
  0xea   : > { %765 = vperm.xlu0 %2333, %v2728_v56   ;;  %v2733_v58 = vpop.f32.mrb[3].mxu1 }
  0xeb   : > { %775 = vperm.xlu1 %2334, %v2733_v58  }
  0xee   : > { %2335 = vset.pattern.permute.xlu0 %v2453_v59 }
  0xef   : > { %933 = vperm.xlu0 %2335, %v2728_v56   ;;  %780 = vperm.xlu1 %2334, %v2730_v57  }
  0xf3   : > { %945 = vperm.xlu0 %2335, %v2730_v57   ;;  %2336 = vset.pattern.permute.xlu1 %v2453_v59 }
  0xf4   : > { %937 = vperm.xlu1 %2336, %v2725_v55  }
  0xf7   : > { %2338 = vset.pattern.permute.xlu0 %v2454_v60 }
  0xf8   : > { %1102 = vperm.xlu0 %2338, %v2725_v55   ;;  %941 = vperm.xlu1 %2336, %v2733_v58  }
  0xfc   : > { %2339 = vset.pattern.permute.xlu0 %v2455_v61  ;;  %2337 = vset.pattern.permute.xlu1 %v2454_v60 }
  0xfd   : > { %1263 = vperm.xlu0 %2339, %v2728_v56   ;;  %1098 = vperm.xlu1 %2337, %v2728_v56  }
 0x101   : > { %1275 = vperm.xlu0 %2339, %v2730_v57   ;;  %1110 = vperm.xlu1 %2337, %v2730_v57  }
 0x105   : > { %1106 = vperm.xlu1 %2337, %v2733_v58  }
 0x109   : > { %2340 = vset.pattern.permute.xlu1 %v2455_v61 }
 0x10a   : > { %1267 = vperm.xlu1 %2340, %v2725_v55  }
 0x10e   : > { %1271 = vperm.xlu1 %2340, %v2733_v58  }
 0x11b   : > { %v565_v62 = vpop.f32.mrb[0].mxu0 }
 0x11c   : > { %v2051_v63 = vpop.f32.mrb[1].mxu0 }
 0x11f   : > { %v570_v0 = vpop.f32.mrb[2].mxu0 }
 0x120   : > { %v2248_v1 = vpack.c.bf16 %v570_v0, %v565_v62  ;;  %v2054_v2 = vpop.f32.mrb[3].mxu0 }
 0x122   : > { %2249 = vmatprep.subr.bf16.mxu1 %v2248_v1 }
 0x123   : > { %2251 = vmatpush3.bf16.xpose.msra.mxu1 %v2248_v1  ;;  %v575_v3 = vpop.f32.mrb[4].mxu0  ;;  %v377_v1 = vunpack.c.3.s8 %v373_v43 }
 0x124   : > { %v2057_v4 = vpop.f32.mrb[5].mxu0 }
 0x125   : > { %vm2801_vm9 = vcmp.gt.s32.totalorder %v377_v1, 0 }
 0x127   : > { %v580_v5 = vpop.f32.mrb[6].mxu0 }
 0x128   : > { %v2252_v6 = vpack.c.bf16 %v580_v5, %v575_v3  ;;  %v2060_v7 = vpop.f32.mrb[7].mxu0 }
 0x12a   : > { %2253 = vmatprep.subr.bf16.mxu1 %v2252_v6 }
 0x12b   : > { %2255 = vmatpush3.bf16.xpose.msra.mxu1 %v2252_v6  ;;  %v585_v8 = vpop.f32.mrb[8].mxu0 }
 0x12c   : > { %v2063_v9 = vpop.f32.mrb[9].mxu0 }
 0x12f   : > { %v590_v10 = vpop.f32.mrb[10].mxu0 }
 0x130   : > { %v2749_v11 = vpack.c.bf16 %v590_v10, %v585_v8  ;;  %v2066_v12 = vpop.f32.mrb[11].mxu0 }
 0x132   : > { %2257 = vmatprep.subr.bf16.mxu1 %v2749_v11 }
 0x133   : > { %v595_v13 = vpop.f32.mrb[12].mxu0 }
 0x134   : > { %v2069_v14 = vpop.f32.mrb[13].mxu0 }
 0x137   : > { %v600_v15 = vpop.f32.mrb[14].mxu0 }
 0x138   : > { %v2752_v16 = vpack.c.bf16 %v600_v15, %v595_v13  ;;  %v2072_v17 = vpop.f32.mrb[15].mxu0 }
 0x13b   : > { %v605_v18 = vpop.f32.mrb[16].mxu0 }
 0x13c   : > { %v2075_v19 = vpop.f32.mrb[17].mxu0 }
 0x13f   : > { %v610_v20 = vpop.f32.mrb[18].mxu0 }
 0x140   : > { %v2754_v21 = vpack.c.bf16 %v610_v20, %v605_v18  ;;  %v2078_v22 = vpop.f32.mrb[19].mxu0  ;;  %v1115_v18 = vsub.s32 2, %v2764_v39 }
 0x143   : > { %v615_v23 = vpop.f32.mrb[20].mxu0 }
 0x144   : > { %v2081_v24 = vpop.f32.mrb[21].mxu0 }
 0x147   : > { %v620_v25 = vpop.f32.mrb[22].mxu0 }
 0x148   : > { %v2756_v26 = vpack.c.bf16 %v620_v25, %v615_v23  ;;  %v2084_v27 = vpop.f32.mrb[23].mxu0 }
 0x14b   : > { %v625_v28 = vpop.f32.mrb[24].mxu0 }
 0x14c   : > { %v2087_v29 = vpop.f32.mrb[25].mxu0 }
 0x14f   : > { %v630_v30 = vpop.f32.mrb[26].mxu0 }
 0x150   : > { %v2758_v31 = vpack.c.bf16 %v630_v30, %v625_v28  ;;  %v2090_v32 = vpop.f32.mrb[27].mxu0 }
 0x153   : > { %v635_v33 = vpop.f32.mrb[28].mxu0 }
 0x154   : > { %v2093_v34 = vpop.f32.mrb[29].mxu0 }
 0x157   : > { %v640_v36 = vpop.f32.mrb[30].mxu0 }
 0x158   : > { %v2762_v37 = vpack.c.bf16 %v640_v36, %v635_v33  ;;  %v2096_v38 = vpop.f32.mrb[31].mxu0 }
 0x15b   : > { %v2766_v40 = vpop.f32.mrb[32].mxu0 }
 0x15c   : > { %v2099_v42 = vpop.f32.mrb[33].mxu0  ;;  %v786_v44 = vrot.slane %v2766_v40, %v785_v41  ;;  %v951_v2 = vrot.slane %v2766_v40, %v950_v51  ;;  %v1116_v29 = vrot.slane %v2766_v40, %v1115_v18 }
 0x165   : > { %v771_v46 = vpop.permute.xlu0 %770 }
 0x166   : > { %v788_v47 = vadd.f32 %v786_v44, %v771_v46 }
 0x168   : > { %v796_v48 = vmul.f32 0.2, %v788_v47  ;;  %vm792_vm4 = vcmp.gt.f32.partialorder %v788_v47, 0.0 }
 0x169   : > { %v766_v52 = vpop.permute.xlu0 %765 }
 0x16a   : > { %v787_v54 = vadd.f32 %v786_v44, %v766_v52  ;;  %v776_v59 = vpop.permute.xlu1 %775  ;;  %v800_v60 = vsel %vm792_vm4, %v788_v47, %v796_v48  ;;  %v1280_v47 = vsub.s32 3, %v2764_v39 }
 0x16b   : > { %v789_v61 = vadd.f32 %v786_v44, %v776_v59  ;;  %v2780_v62 = vsel %vm2773_vm3, %v800_v60, -1e+30 }
 0x16c   : > { %v795_v63 = vmul.f32 0.2, %v787_v54  ;;  %809 = vmax.xlane.f32.xlu0 %v2780_v62  ;;  %vm791_vm6 = vcmp.gt.f32.partialorder %v787_v54, 0.0  ;;  %v1281_v39 = vrot.slane %v2766_v40, %v1280_v47 }
 0x16d   : > { %v797_v3 = vmul.f32 0.2, %v789_v61  ;;  %vm793_vm8 = vcmp.gt.f32.partialorder %v789_v61, 0.0 }
 0x16e   : > { %v934_v5 = vpop.permute.xlu0 %933  ;;  %v781_v6 = vpop.permute.xlu1 %780  ;;  %v799_v7 = vsel %vm791_vm6, %v787_v54, %v795_v63 }
 0x16f   : > { %v952_v8 = vadd.f32 %v951_v2, %v934_v5  ;;  %v790_v9 = vadd.f32 %v786_v44, %v781_v6  ;;  %v2794_v10 = vsel %vm2783_vm5, %v799_v7, -1e+30  ;;  %v801_v12 = vsel %vm793_vm8, %v789_v61, %v797_v3 }
 0x170   : > { %807 = vmax.xlane.f32.xlu1 %v2794_v10  ;;  %v2799_v13 = vsel %vm2788_vm7, %v801_v12, -1e+30 }
 0x171   : > { %v960_v15 = vmul.f32 0.2, %v952_v8  ;;  %v798_v17 = vmul.f32 0.2, %v790_v9  ;;  %811 = vmax.xlane.f32.xlu0 %v2799_v13  ;;  %vm956_vm10 = vcmp.gt.f32.partialorder %v952_v8, 0.0  ;;  %vm794_vm11 = vcmp.gt.f32.partialorder %v790_v9, 0.0 }
 0x172   : > { %v946_v19 = vpop.permute.xlu0 %945 }
 0x173   : > { %v955_v20 = vadd.f32 %v951_v2, %v946_v19  ;;  %v938_v22 = vpop.permute.xlu1 %937  ;;  %v964_v23 = vsel %vm956_vm10, %v952_v8, %v960_v15  ;;  %v802_v24 = vsel %vm794_vm11, %v790_v9, %v798_v17 }
 0x174   : > { %v953_v25 = vadd.f32 %v951_v2, %v938_v22  ;;  %v2809_v27 = vsel %vm2783_vm5, %v964_v23, -1e+30  ;;  %v2813_v28 = vsel %vm2801_vm9, %v802_v24, -1e+30 }
 0x175   : > { %972 = vmax.xlane.f32.xlu0 %v2809_v27  ;;  %813 = vmax.xlane.f32.xlu1 %v2813_v28  ;;  %v963_v30 = vmul.f32 0.2, %v955_v20  ;;  %vm959_vm13 = vcmp.gt.f32.partialorder %v955_v20, 0.0 }
 0x176   : > { %v961_v32 = vmul.f32 0.2, %v953_v25  ;;  %vm957_vm12 = vcmp.gt.f32.partialorder %v953_v25, 0.0 }
 0x177   : > { %v1103_v33 = vpop.permute.xlu0 %1102  ;;  %v942_v34 = vpop.permute.xlu1 %941  ;;  %v967_v44 = vsel %vm959_vm13, %v955_v20, %v963_v30 }
 0x178   : > { %v1118_v35 = vadd.f32 %v1116_v29, %v1103_v33  ;;  %v954_v36 = vadd.f32 %v951_v2, %v942_v34  ;;  %v965_v38 = vsel %vm957_vm12, %v953_v25, %v961_v32  ;;  %v2826_v50 = vsel %vm2801_vm9, %v967_v44, -1e+30 }
 0x179   : > { %v2820_v41 = vsel %vm2773_vm3, %v965_v38, -1e+30 }
 0x17a   : > { %v1126_v42 = vmul.f32 0.2, %v1118_v35  ;;  %v962_v43 = vmul.f32 0.2, %v954_v36  ;;  %974 = vmax.xlane.f32.xlu1 %v2820_v41  ;;  %vm958_vm14 = vcmp.gt.f32.partialorder %v954_v36, 0.0  ;;  %vm1122_vm15 = vcmp.gt.f32.partialorder %v1118_v35, 0.0 }
 0x17c   : > { %v1099_v45 = vpop.permute.xlu1 %1098  ;;  %v966_v46 = vsel %vm958_vm14, %v954_v36, %v962_v43  ;;  %v1130_v52 = vsel %vm1122_vm15, %v1118_v35, %v1126_v42  ;;  %v1264_v53 = vpop.permute.xlu0 %1263 }
 0x17d   : > { %v1117_v48 = vadd.f32 %v1116_v29, %v1099_v45  ;;  %v2830_v51 = vsel %vm2788_vm7, %v966_v46, -1e+30  ;;  %v2837_v61 = vsel %vm2773_vm3, %v1130_v52, -1e+30  ;;  %v1282_v2 = vadd.f32 %v1281_v39, %v1264_v53 }
 0x17e   : > { %978 = vmax.xlane.f32.xlu1 %v2826_v50  ;;  %976 = vmax.xlane.f32.xlu0 %v2830_v51 }
 0x17f   : > { %v1125_v54 = vmul.f32 0.2, %v1117_v48  ;;  %vm1121_vm1 = vcmp.gt.f32.partialorder %v1117_v48, 0.0  ;;  %v1290_v9 = vmul.f32 0.2, %v1282_v2  ;;  %vm1286_vm6 = vcmp.gt.f32.partialorder %v1282_v2, 0.0 }
 0x180   : > { %v1111_v59 = vpop.permute.xlu1 %1110  ;;  %v1276_v6 = vpop.permute.xlu0 %1275 }
 0x181   : > { %v1120_v60 = vadd.f32 %v1116_v29, %v1111_v59  ;;  %v1129_v63 = vsel %vm1121_vm1, %v1117_v48, %v1125_v54  ;;  %v1285_v15 = vadd.f32 %v1281_v39, %v1276_v6  ;;  %v1294_v22 = vsel %vm1286_vm6, %v1282_v2, %v1290_v9 }
 0x182   : > { %1139 = vmax.xlane.f32.xlu1 %v2837_v61  ;;  %v2842_v1 = vsel %vm2783_vm5, %v1129_v63, -1e+30  ;;  %v2857_v30 = vsel %vm2783_vm5, %v1294_v22, -1e+30 }
 0x183   : > { %v1128_v3 = vmul.f32 0.2, %v1120_v60  ;;  %1137 = vmax.xlane.f32.xlu0 %v2842_v1  ;;  %vm1124_vm2 = vcmp.gt.f32.partialorder %v1120_v60, 0.0  ;;  %v1293_v23 = vmul.f32 0.2, %v1285_v15  ;;  %vm1289_vm10 = vcmp.gt.f32.partialorder %v1285_v15, 0.0 }
 0x184   : > { %v1107_v5 = vpop.permute.xlu1 %1106 }
 0x185   : > { %v1119_v40 = vadd.f32 %v1116_v29, %v1107_v5  ;;  %v1132_v7 = vsel %vm1124_vm2, %v1120_v60, %v1128_v3  ;;  %v1297_v35 = vsel %vm1289_vm10, %v1285_v15, %v1293_v23 }
 0x186   : > { %v2847_v8 = vsel %vm2801_vm9, %v1132_v7, -1e+30  ;;  %v2867_v38 = vsel %vm2801_vm9, %v1297_v35, -1e+30 }
 0x187   : > { %v1127_v12 = vmul.f32 0.2, %v1119_v40  ;;  %1143 = vmax.xlane.f32.xlu1 %v2847_v8  ;;  %vm1123_vm4 = vcmp.gt.f32.partialorder %v1119_v40, 0.0 }
 0x189   : > { %v1268_v17 = vpop.permute.xlu1 %1267  ;;  %v1131_v18 = vsel %vm1123_vm4, %v1119_v40, %v1127_v12 }
 0x18a   : > { %v1283_v19 = vadd.f32 %v1281_v39, %v1268_v17  ;;  %v2852_v20 = vsel %vm2788_vm7, %v1131_v18, -1e+30 }
 0x18b   : > { %1141 = vmax.xlane.f32.xlu0 %v2852_v20 }
 0x18c   : > { %v1291_v24 = vmul.f32 0.2, %v1283_v19  ;;  %vm1287_vm8 = vcmp.gt.f32.partialorder %v1283_v19, 0.0 }
 0x18d   : > { %v1272_v25 = vpop.permute.xlu1 %1271 }
 0x18e   : > { %v1284_v29 = vadd.f32 %v1281_v39, %v1272_v25  ;;  %v1295_v32 = vsel %vm1287_vm8, %v1283_v19, %v1291_v24 }
 0x18f   : > { %1302 = vmax.xlane.f32.xlu0 %v2857_v30  ;;  %v2862_v33 = vsel %vm2773_vm3, %v1295_v32, -1e+30 }
 0x190   : > { %v1292_v34 = vmul.f32 0.2, %v1284_v29  ;;  %1304 = vmax.xlane.f32.xlu1 %v2862_v33  ;;  %vm1288_vm11 = vcmp.gt.f32.partialorder %v1284_v29, 0.0 }
 0x192   : > { %v1296_v36 = vsel %vm1288_vm11, %v1284_v29, %v1292_v34 }
 0x193   : > { %v2871_v42 = vsel %vm2788_vm7, %v1296_v36, -1e+30 }
 0x194   : > { %1308 = vmax.xlane.f32.xlu1 %v2867_v38  ;;  %1306 = vmax.xlane.f32.xlu0 %v2871_v42 }
 0x1f9   : > { %v810_v43 = vpop.xlane.xlu0 %809 }
 0x1fa   : > { %v816_v44 = vsub.f32 %v2780_v62, %v810_v43 }
 0x1fc   : > { %v821_v45 = vmul.f32 1.442695, %v816_v44 }
 0x1fd   : > { %v808_v46 = vpop.xlane.xlu1 %807 }
 0x1fe   : > { %v815_v47 = vsub.f32 %v2794_v10, %v808_v46  ;;  %v812_v48 = vpop.xlane.xlu0 %811  ;;  %2341 = vpow2.f32 %v821_v45 }
 0x1ff   : > { %v817_v52 = vsub.f32 %v2799_v13, %v812_v48 }
 0x200   : > { %v819_v53 = vmul.f32 1.442695, %v815_v47 }
 0x201   : > { %v823_v54 = vmul.f32 1.442695, %v817_v52 }
 0x202   : > { %2343 = vpow2.f32 %v819_v53  ;;  %v973_v59 = vpop.xlane.xlu0 %972  ;;  %v814_v39 = vpop.xlane.xlu1 %813 }
 0x203   : > { %2345 = vpow2.f32 %v823_v54  ;;  %v980_v60 = vsub.f32 %v2809_v27, %v973_v59  ;;  %v818_v63 = vsub.f32 %v2813_v28, %v814_v39 }
 0x205   : > { %v984_v2 = vmul.f32 1.442695, %v980_v60  ;;  %v825_v62 = vmul.f32 1.442695, %v818_v63 }
 0x207   : > { %2347 = vpow2.f32 %v984_v2  ;;  %v975_v3 = vpop.xlane.xlu1 %974 }
 0x208   : > { %2349 = vpow2.f32 %v825_v62  ;;  %v981_v10 = vsub.f32 %v2820_v41, %v975_v3  ;;  %v2881_v13 = vpop.eup %2341 }
 0x20a   : > { %v986_v5 = vmul.f32 1.442695, %v981_v10 }
 0x20b   : > { %v977_v6 = vpop.xlane.xlu0 %976  ;;  %v979_v40 = vpop.xlane.xlu1 %978 }
 0x20c   : > { %v2883_v7 = vpop.eup %2343  ;;  %2351 = vpow2.f32 %v986_v5  ;;  %v982_v9 = vsub.f32 %v2830_v51, %v977_v6  ;;  %v983_v41 = vsub.f32 %v2826_v50, %v979_v40 }
 0x20d   : > { %v2886_v27 = vpop.eup %2345  ;;  %2122 = vmatprep.mubr.msk.f32.mxu1 %vm2783_vm5, %v2883_v7 }
 0x20e   : > { %2123 = vmatmul.mubr.msk.f32.vlgmr.msra.gmra.mrb[4].mxu1 %vm2773_vm3, %v2881_v13  ;;  %v988_v28 = vmul.f32 1.442695, %v982_v9 }
 0x20f   : > { %2259 = vmatpush3.bf16.xpose.msra.mxu1 %v2749_v11  ;;  %2125 = vmatprep.mubr.msk.f32.mxu1 %vm2788_vm7, %v2886_v27  ;;  %v1140_v51 = vpop.xlane.xlu1 %1139  ;;  %v990_v11 = vmul.f32 1.442695, %v983_v41  ;;  %v828_v41 = vsel %vm2773_vm3, %v2881_v13, 0.0 }
 0x210   : > { %2261 = vmatprep.subr.bf16.mxu1 %v2752_v16  ;;  %v1146_v12 = vsub.f32 %v2837_v61, %v1140_v51  ;;  %v1138_v15 = vpop.xlane.xlu0 %1137  ;;  %2353 = vpow2.f32 %v988_v28  ;;  %v827_v28 = vsel %vm2783_vm5, %v2883_v7, 0.0 }
 0x211   : > { %v2348_v17 = vpop.eup %2347  ;;  %v1145_v18 = vsub.f32 %v2842_v1, %v1138_v15 }
 0x212   : > { %v2902_v19 = vpop.eup %2349  ;;  %v1151_v22 = vmul.f32 1.442695, %v1146_v12  ;;  %v992_v50 = vsel %vm2783_vm5, %v2348_v17, 0.0 }
 0x213   : > { %v1149_v23 = vmul.f32 1.442695, %v1145_v18  ;;  %2126 = vmatmul.mubr.msk.f32.gmra.mrb[6].mxu1 %vm2801_vm9, %v2902_v19  ;;  %996 = vadd.xlane.f32.xlu0 %v992_v50  ;;  %v830_v0 = vsel %vm2801_vm9, %v2902_v19, 0.0  ;;  %v1501_v50 = vld [vmem:[%s3123_s6 + $0x8] sm:$0xff] }
 0x214   : > { %2355 = vpow2.f32 %v1151_v22  ;;  %2136 = vmatprep.mubr.msk.f32.mxu1 %vm2783_vm5, %v2348_v17  ;;  %v1144_v25 = vpop.xlane.xlu1 %1143  ;;  %v1500_v22 = vld [vmem:[%s3123_s6] sm:$0xff] }
 0x215   : > { %2357 = vpow2.f32 %v1149_v23  ;;  %v1148_v45 = vsub.f32 %v2847_v8, %v1144_v25  ;;  %v1502_v23 = vld [vmem:[%s3123_s6 + $0x10] sm:$0xff]  ;;  %v1505_v25 = vld [vmem:[%s3123_s6 + $0x28] sm:$0xff] }
 0x216   : > { %v2352_v61 = vpop.eup %2351  ;;  %2359 = vpow2.f32 %v990_v11  ;;  %v2280_v11 = vpack.c.bf16 %v1501_v50, %v1500_v22 }
 0x217   : > { %2263 = vmatpush3.bf16.xpose.msra.mxu1 %v2752_v16  ;;  %v993_v1 = vsel %vm2773_vm3, %v2352_v61, 0.0 }
 0x218   : > { %2265 = vmatprep.subr.bf16.mxu1 %v2754_v21  ;;  %v1142_v24 = vpop.xlane.xlu0 %1141  ;;  %998 = vadd.xlane.f32.xlu1 %v993_v1  ;;  %v1504_v1 = vld [vmem:[%s3123_s6 + $0x20] sm:$0xff] }
 0x219   : > { %v1147_v29 = vsub.f32 %v2852_v20, %v1142_v24 }
 0x21a   : > { %v2354_v34 = vpop.eup %2353 }
 0x21c   : > { %v1303_v32 = vpop.xlane.xlu0 %1302 }
 0x21d   : > { %v1310_v35 = vsub.f32 %v2857_v30, %v1303_v32  ;;  %v1305_v36 = vpop.xlane.xlu1 %1304  ;;  %v1153_v30 = vmul.f32 1.442695, %v1147_v29  ;;  %v2288_v29 = vpack.c.bf16 %v1505_v25, %v1504_v1 }
 0x21e   : > { %v2356_v43 = vpop.eup %2355  ;;  %2137 = vmatmul.mubr.msk.f32.vlgmr.msra.gmra.mrb[8].mxu1 %vm2773_vm3, %v2352_v61  ;;  %v1311_v16 = vsub.f32 %v2862_v33, %v1305_v36  ;;  %v1503_v61 = vld [vmem:[%s3123_s6 + $0x18] sm:$0xff] }
 0x21f   : > { %v2358_v44 = vpop.eup %2357  ;;  %v1314_v46 = vmul.f32 1.442695, %v1310_v35  ;;  %2139 = vmatprep.mubr.msk.f32.mxu1 %vm2788_vm7, %v2354_v34  ;;  %2267 = vmatpush3.bf16.xpose.msra.mxu1 %v2754_v21  ;;  %v1158_v20 = vsel %vm2773_vm3, %v2356_v43, 0.0  ;;  %v1155_v21 = vmul.f32 1.442695, %v1148_v45  ;;  %v2284_v24 = vpack.c.bf16 %v1503_v61, %v1502_v23 }
 0x220   : > { %v1316_v47 = vmul.f32 1.442695, %v1311_v16  ;;  %2269 = vmatprep.subr.bf16.mxu1 %v2756_v26  ;;  %1163 = vadd.xlane.f32.xlu1 %v1158_v20  ;;  %v1157_v33 = vsel %vm2783_vm5, %v2358_v44, 0.0  ;;  %v2360_v48 = vpop.eup %2359  ;;  %v1507_v20 = vld [vmem:[%s3123_s6 + $0x38] sm:$0xff] }
 0x221   : > { %2361 = vpow2.f32 %v1314_v46  ;;  %1161 = vadd.xlane.f32.xlu0 %v1157_v33  ;;  %v1307_v8 = vpop.xlane.xlu0 %1306  ;;  %v1309_v52 = vpop.xlane.xlu1 %1308  ;;  %v995_v3 = vsel %vm2801_vm9, %v2360_v48, 0.0  ;;  %v1506_v46 = vld [vmem:[%s3123_s6 + $0x30] sm:$0xff] }
 0x222   : > { %2363 = vpow2.f32 %v1316_v47  ;;  %2140 = vmatmul.mubr.msk.f32.gmra.mrb[10].mxu1 %vm2801_vm9, %v2360_v48  ;;  %v1312_v53 = vsub.f32 %v2871_v42, %v1307_v8  ;;  %v1313_v54 = vsub.f32 %v2867_v38, %v1309_v52  ;;  %v2292_v48 = vpack.c.bf16 %v1507_v20, %v1506_v46 }
 0x223   : > { %2150 = vmatprep.mubr.msk.f32.mxu1 %vm2783_vm5, %v2358_v44  ;;  %2365 = vpow2.f32 %v1153_v30 }
 0x224   : > { %2367 = vpow2.f32 %v1155_v21  ;;  %v1318_v59 = vmul.f32 1.442695, %v1312_v53  ;;  %v1320_v39 = vmul.f32 1.442695, %v1313_v54  ;;  %v1508_v53 = vld [vmem:[%s3123_s6 + $0x40] sm:$0xff]  ;;  %v1509_v54 = vld [vmem:[%s3123_s6 + $0x48] sm:$0xff] }
 0x226   : > { %2369 = vpow2.f32 %v1318_v59  ;;  %v2296_v59 = vpack.c.bf16 %v1509_v54, %v1508_v53 }
 0x227   : > { %2271 = vmatpush3.bf16.xpose.msra.mxu1 %v2756_v26  ;;  %2371 = vpow2.f32 %v1320_v39  ;;  %v994_v26 = vsel %vm2788_vm7, %v2354_v34, 0.0  ;;  %v1510_v39 = vld [vmem:[%s3123_s6 + $0x50] sm:$0xff] }
 0x228   : > { %2273 = vmatprep.subr.bf16.mxu1 %v2758_v31 }
 0x22b   : > { %v2362_v60 = vpop.eup %2361 }
 0x22c   : > { %v2364_v63 = vpop.eup %2363  ;;  %v1322_v42 = vsel %vm2783_vm5, %v2362_v60, 0.0 }
 0x22d   : > { %1326 = vadd.xlane.f32.xlu0 %v1322_v42  ;;  %v1323_v2 = vsel %vm2773_vm3, %v2364_v63, 0.0  ;;  %v2366_v62 = vpop.eup %2365 }
 0x22e   : > { %2151 = vmatmul.mubr.msk.f32.vlgmr.msra.gmra.mrb[12].mxu1 %vm2773_vm3, %v2356_v43  ;;  %1328 = vadd.xlane.f32.xlu1 %v1323_v2  ;;  %v2368_v38 = vpop.eup %2367  ;;  %v1513_v2 = vld [vmem:[%s3123_s6 + $0x68] sm:$0xff] }
 0x22f   : > { %2153 = vmatprep.mubr.msk.f32.mxu1 %vm2788_vm7, %v2366_v62  ;;  %2275 = vmatpush3.bf16.xpose.msra.mxu1 %v2758_v31  ;;  %v1159_v31 = vsel %vm2788_vm7, %v2366_v62, 0.0  ;;  %v1160_v5 = vsel %vm2801_vm9, %v2368_v38, 0.0 }
 0x230   : > { %2277 = vmatprep.subr.bf16.mxu1 %v2762_v37  ;;  %v2370_v10 = vpop.eup %2369 }
 0x231   : > { %1000 = vadd.xlane.f32.xlu0 %v994_v26  ;;  %v2372_v6 = vpop.eup %2371  ;;  %v1324_v40 = vsel %vm2788_vm7, %v2370_v10, 0.0 }
 0x232   : > { %2154 = vmatmul.mubr.msk.f32.gmra.mrb[14].mxu1 %vm2801_vm9, %v2368_v38  ;;  %1002 = vadd.xlane.f32.xlu1 %v995_v3  ;;  %v1325_v9 = vsel %vm2801_vm9, %v2372_v6, 0.0 }
 0x233   : > { %2164 = vmatprep.mubr.msk.f32.mxu1 %vm2783_vm5, %v2362_v60  ;;  %v1511_v60 = vld [vmem:[%s3123_s6 + $0x58] sm:$0xff]  ;;  %vm1484_vm5 = vcmask 785408  }
 0x234   : > { %v2300_v42 = vpack.c.bf16 %v1511_v60, %v1510_v39  ;;  %v1912_v39 = vld [vmem:[%s3122_s5] ss:$0 sm:$0xff] }
 0x235   : > { %1165 = vadd.xlane.f32.xlu0 %v1159_v31 }
 0x236   : > { %1167 = vadd.xlane.f32.xlu1 %v1160_v5 }
 0x237   : > { %2279 = vmatpush3.bf16.xpose.msra.mxu1 %v2762_v37  ;;  %v829_v37 = vsel %vm2788_vm7, %v2886_v27, 0.0 }
 0x238   : > { %2281 = vmatprep.subr.bf16.mxu1 %v2280_v11 }
 0x239   : > { %1330 = vadd.xlane.f32.xlu0 %v1324_v40 }
 0x23a   : > { %1332 = vadd.xlane.f32.xlu1 %v1325_v9  ;;  %v1514_v9 = vld [vmem:[%s3123_s6 + $0x70] sm:$0xff] }
 0x23d   : > { %831 = vadd.xlane.f32.xlu0 %v827_v28  ;;  %v1515_v28 = vld [vmem:[%s3123_s6 + $0x78] sm:$0xff] }
 0x23e   : > { %2165 = vmatmul.mubr.msk.f32.vlgmr.msra.gmra.mrb[16].mxu1 %vm2773_vm3, %v2364_v63  ;;  %833 = vadd.xlane.f32.xlu1 %v828_v41  ;;  %v1512_v63 = vld [vmem:[%s3123_s6 + $0x60] sm:$0xff]  ;;  %vm1479_vm3 = vcmask 523264  }
 0x23f   : > { %2167 = vmatprep.mubr.msk.f32.mxu1 %vm2788_vm7, %v2370_v10  ;;  %2283 = vmatpush3.bf16.msra.mxu1 %v2280_v11  ;;  %v2304_v62 = vpack.c.bf16 %v1513_v2, %v1512_v63 }
 0x240   : > { %2285 = vmatprep.subr.bf16.mxu1 %v2284_v24 }
 0x241   : > { %835 = vadd.xlane.f32.xlu0 %v829_v37 }
 0x242   : > { %2168 = vmatmul.mubr.msk.f32.gmra.mrb[18].mxu1 %vm2801_vm9, %v2372_v6  ;;  %837 = vadd.xlane.f32.xlu1 %v830_v0 }
 0x243   : > { %2287 = vmatpush3.bf16.msra.mxu1 %v2284_v24 }
 0x244   : > { %2289 = vmatprep.subr.bf16.mxu1 %v2288_v29 }
 0x247   : > { %2291 = vmatpush3.bf16.msra.mxu1 %v2288_v29  ;;  %v1895_v29 = vld [vmem:[%s3125_s8] ss:$0 sm:$0xff] }
 0x248   : > { %2293 = vmatprep.subr.bf16.mxu1 %v2292_v48 }
 0x24b   : > { %2295 = vmatpush3.bf16.msra.mxu1 %v2292_v48 }
 0x24c   : > { %2297 = vmatprep.subr.bf16.mxu1 %v2296_v59 }
 0x24f   : > { %2299 = vmatpush3.bf16.msra.mxu1 %v2296_v59 }
 0x250   : > { %2301 = vmatprep.subr.bf16.mxu1 %v2300_v42 }
 0x253   : > { %2303 = vmatpush3.bf16.msra.mxu1 %v2300_v42 }
 0x254   : > { %2305 = vmatprep.subr.bf16.mxu1 %v2304_v62 }
 0x257   : > { %2307 = vmatpush3.bf16.msra.mxu1 %v2304_v62 }
 0x2a0   : > { %v997_v49 = vpop.xlane.xlu0 %996 }
 0x2a5   : > { %v999_v13 = vpop.xlane.xlu1 %998 }
 0x2a6   : > { %2373 = vrcp.f32 %v999_v13  ;;  %v2308_v13 = vpack.c.bf16 %v1515_v28, %v1514_v9 }
 0x2a7   : > { %2375 = vrcp.f32 %v997_v49 }
 0x2a8   : > { %2309 = vmatprep.subr.bf16.mxu1 %v2308_v13 }
 0x2a9   : > { %2311 = vmatpush3.bf16.msra.mxu1 %v2308_v13 }
 0x2ad   : > { %v1164_v7 = vpop.xlane.xlu1 %1163 }
 0x2ae   : > { %v1162_v51 = vpop.xlane.xlu0 %1161 }
 0x2b0   : > { %v2374_v32 = vpop.eup %2373 }
 0x2b1   : > { %v2376_v35 = vpop.eup %2375 }
 0x2ba   : > { %v2988_v4 = vpop.xlane.xlu0 %1326 }
 0x2bb   : > { %v2984_v15 = vpop.xlane.xlu1 %1328 }
 0x2be   : > { %v1001_v19 = vpop.xlane.xlu0 %1000 }
 0x2bf   : > { %v1003_v14 = vpop.xlane.xlu1 %1002 }
 0x2c0   : > { %2377 = vrcp.f32 %v1003_v14 }
 0x2c1   : > { %2379 = vrcp.f32 %v1001_v19 }
 0x2c2   : > { %2381 = vrcp.f32 %v1164_v7  ;;  %v1166_v21 = vpop.xlane.xlu0 %1165 }
 0x2c3   : > { %2383 = vrcp.f32 %v1162_v51  ;;  %v1168_v52 = vpop.xlane.xlu1 %1167 }
 0x2c4   : > { %2385 = vrcp.f32 %v1168_v52 }
 0x2c5   : > { %2387 = vrcp.f32 %v1166_v21 }
 0x2c6   : > { %2389 = vrcp.f32 %v2984_v15  ;;  %v1331_v51 = vpop.xlane.xlu0 %1330 }
 0x2c7   : > { %2391 = vrcp.f32 %v2988_v4  ;;  %v1333_v7 = vpop.xlane.xlu1 %1332 }
 0x2c8   : > { %2393 = vrcp.f32 %v1333_v7 }
 0x2c9   : > { %2395 = vrcp.f32 %v1331_v51 }
 0x2ca   : > { %v2378_v44 = vpop.eup %2377 }
 0x2cb   : > { %v2380_v30 = vpop.eup %2379 }
 0x2cc   : > { %v2382_v26 = vpop.eup %2381 }
 0x2cd   : > { %v2384_v3 = vpop.eup %2383 }
 0x2ce   : > { %v2386_v6 = vpop.eup %2385 }
 0x2cf   : > { %v2388_v41 = vpop.eup %2387 }
 0x2d0   : > { %v2390_v14 = vpop.eup %2389 }
 0x2d1   : > { %v2392_v22 = vpop.eup %2391 }
 0x2d2   : > { %v2394_v15 = vpop.eup %2393 }
 0x2d3   : > { %v2396_v61 = vpop.eup %2395 }
 0x2e1   : > { %v2982_v12 = vpop.f32.mrb[4].mxu1 }
 0x2e2   : > { %v2986_v17 = vpop.f32.mrb[5].mxu1 }
 0x2e6   : > { %v2990_v27 = vpop.f32.mrb[6].mxu1 }
 0x2e7   : > { %v2992_v18 = vpop.f32.mrb[7].mxu1 }
 0x2f1   : > { %v2138_v34 = vpop.f32.mrb[8].mxu1 }
 0x2f2   : > { %v1094_v36 = vmul.f32 %v2374_v32, %v2138_v34  ;;  %v1070_v43 = vpop.f32.mrb[9].mxu1  ;;  %v832_v32 = vpop.xlane.xlu0 %831 }
 0x2f3   : > { %v1093_v16 = vmul.f32 %v2376_v35, %v1070_v43  ;;  %v834_v34 = vpop.xlane.xlu1 %833 }
 0x2f4   : > { %1433 = vrot.lane.b32.xlu1 %v1094_v36, %s2456_s23  ;;  %2397 = vrcp.f32 %v834_v34 }
 0x2f5   : > { %1431 = vrot.lane.b32.xlu0 %v1093_v16, %s2456_s23  ;;  %v2141_v45 = vpop.f32.mrb[10].mxu1  ;;  %2399 = vrcp.f32 %v832_v32 }
 0x2f6   : > { %v1096_v47 = vmul.f32 %v2378_v44, %v2141_v45  ;;  %v1080_v33 = vpop.f32.mrb[11].mxu1  ;;  %v836_v35 = vpop.xlane.xlu0 %835 }
 0x2f7   : > { %v1095_v8 = vmul.f32 %v2380_v30, %v1080_v33  ;;  %v838_v36 = vpop.xlane.xlu1 %837 }
 0x2f8   : > { %2401 = vrcp.f32 %v838_v36 }
 0x2f9   : > { %1435 = vrot.lane.b32.xlu1 %v1095_v8, %s2456_s23  ;;  %1437 = vrot.lane.b32.xlu0 %v1096_v47, %s2456_s23  ;;  %2403 = vrcp.f32 %v836_v35 }
 0x2fe   : > { %v2398_v30 = vpop.eup %2397 }
 0x2ff   : > { %v2400_v33 = vpop.eup %2399  ;;  %v929_v48 = vmul.f32 %v2398_v30, %v2982_v12 }
 0x300   : > { %v928_v52 = vmul.f32 %v2400_v33, %v2986_v17 }
 0x301   : > { %v2152_v38 = vpop.f32.mrb[12].mxu1 }
 0x302   : > { %v1259_v31 = vmul.f32 %v2382_v26, %v2152_v38  ;;  %v1235_v10 = vpop.f32.mrb[13].mxu1  ;;  %v2402_v53 = vpop.eup %2401 }
 0x303   : > { %v1258_v5 = vmul.f32 %v2384_v3, %v1235_v10  ;;  %v2404_v63 = vpop.eup %2403  ;;  %v931_v12 = vmul.f32 %v2402_v53, %v2990_v27 }
 0x304   : > { %1449 = vrot.lane.b32.xlu0 %v1259_v31, %s2457_s25  ;;  %v930_v62 = vmul.f32 %v2404_v63, %v2992_v18 }
 0x305   : > { %v2155_v40 = vpop.f32.mrb[14].mxu1  ;;  %1447 = vrot.lane.b32.xlu1 %v1258_v5, %s2457_s25 }
 0x306   : > { %v1261_v37 = vmul.f32 %v2386_v6, %v2155_v40  ;;  %v1245_v0 = vpop.f32.mrb[15].mxu1 }
 0x307   : > { %v1260_v49 = vmul.f32 %v2388_v41, %v1245_v0 }
 0x308   : > { %1453 = vrot.lane.b32.xlu0 %v1261_v37, %s2457_s25 }
 0x309   : > { %1451 = vrot.lane.b32.xlu1 %v1260_v49, %s2457_s25 }
 0x311   : > { %v2166_v19 = vpop.f32.mrb[16].mxu1 }
 0x312   : > { %v1424_v50 = vmul.f32 %v2390_v14, %v2166_v19  ;;  %v1400_v11 = vpop.f32.mrb[17].mxu1 }
 0x313   : > { %v1423_v23 = vmul.f32 %v2392_v22, %v1400_v11 }
 0x314   : > { %1465 = vrot.lane.b32.xlu0 %v1424_v50, %s2458_s29 }
 0x315   : > { %v2169_v4 = vpop.f32.mrb[18].mxu1  ;;  %1463 = vrot.lane.b32.xlu1 %v1423_v23, %s2458_s29 }
 0x316   : > { %v1426_v1 = vmul.f32 %v2394_v15, %v2169_v4  ;;  %v1410_v24 = vpop.f32.mrb[19].mxu1 }
 0x317   : > { %v1425_v25 = vmul.f32 %v2396_v61, %v1410_v24 }
 0x318   : > { %1469 = vrot.lane.b32.xlu0 %v1426_v1, %s2458_s29 }
 0x319   : > { %1467 = vrot.lane.b32.xlu1 %v1425_v25, %s2458_s29 }
 0x31d   : > { %756 = vrot.lane.b32.xlu1 %v1895_v29, %s2459_s14 }
 0x366   : > { %v1434_v16 = vpop.permute.xlu1 %1433 }
 0x367   : > { %v1432_v43 = vpop.permute.xlu0 %1431  ;;  %v1476_v21 = vsel %vm399_vm0, %v929_v48, %v1434_v16 }
 0x368   : > { %v1475_v54 = vsel %vm399_vm0, %v928_v52, %v1432_v43 }
 0x36b   : > { %v1438_v44 = vpop.permute.xlu0 %1437  ;;  %v1436_v45 = vpop.permute.xlu1 %1435 }
 0x36c   : > { %v1478_v38 = vsel %vm399_vm0, %v931_v12, %v1438_v44  ;;  %v1477_v31 = vsel %vm399_vm0, %v930_v62, %v1436_v45  ;;  %v2437_v12 = vld [vmem:[%s2565_s12 + $0x8] sm:$0xff] }
 0x376   : > { %v1450_v46 = vpop.permute.xlu0 %1449 }
 0x377   : > { %v1448_v20 = vpop.permute.xlu1 %1447  ;;  %v1481_v59 = vsel %vm1479_vm3, %v1476_v21, %v1450_v46 }
 0x378   : > { %v1480_v42 = vsel %vm1479_vm3, %v1475_v54, %v1448_v20 }
 0x37a   : > { %v1454_v47 = vpop.permute.xlu0 %1453 }
 0x37b   : > { %v1452_v8 = vpop.permute.xlu1 %1451  ;;  %v1483_v10 = vsel %vm1479_vm3, %v1478_v38, %v1454_v47 }
 0x37c   : > { %v1482_v27 = vsel %vm1479_vm3, %v1477_v31, %v1452_v8 }
 0x386   : > { %v1466_v60 = vpop.permute.xlu0 %1465 }
 0x387   : > { %v1486_v17 = vsel %vm1484_vm5, %v1481_v59, %v1466_v60  ;;  %v1464_v2 = vpop.permute.xlu1 %1463 }
 0x388   : > { %v1485_v26 = vsel %vm1484_vm5, %v1480_v42, %v1464_v2  ;;  %v1497_v5 = vadd.f32 %v1912_v39, %v1486_v17  ;;  %v2438_v42 = vld [vmem:[%s2565_s12] sm:$0xff] }
 0x389   : > { %v1496_v3 = vadd.f32 %v1912_v39, %v1485_v26 }
 0x38a   : > { %v1470_v6 = vpop.permute.xlu0 %1469 }
 0x38b   : > { %v1488_v40 = vsel %vm1484_vm5, %v1483_v10, %v1470_v6  ;;  %2202 = vmatprep.mubr.f32.mxu1 %v1496_v3  ;;  %v1468_v9 = vpop.permute.xlu1 %1467 }
 0x38c   : > { %v1487_v28 = vsel %vm1484_vm5, %v1482_v27, %v1468_v9  ;;  %2203 = vmatmul.mubr.f32.vlgmr.msra.gmra.mrb[20].mxu1 %v1497_v5  ;;  %v1499_v41 = vadd.f32 %v1912_v39, %v1488_v40  ;;  %v2439_v9 = vld [vmem:[%s2565_s12 + $0x18] sm:$0xff] }
 0x38d   : > { %v1498_v18 = vadd.f32 %v1912_v39, %v1487_v28  ;;  %v2440_v28 = vld [vmem:[%s2565_s12 + $0x10] sm:$0xff] }
 0x38f   : > { %2205 = vmatprep.mubr.f32.mxu1 %v1498_v18  ;;  %v757_v37 = vpop.permute.xlu1 %756 }
 0x390   : > { %2206 = vmatmul.mubr.f32.gmra.mrb[22].mxu1 %v1499_v41  ;;  %v760_v0 = vadd.f32 %v2725_v55, %v757_v37  ;;  %v759_v13 = vadd.f32 %v757_v37, %v2728_v56  ;;  %v762_v49 = vadd.f32 %v2730_v57, %v757_v37  ;;  %v761_v7 = vadd.f32 %v757_v37, %v2733_v58  ;;  %v1913_v55 = vld [vmem:[%s3124_s7] ss:$0 sm:$0xff] }
 0x392   : > { %1614 = vrot.lane.b32.xlu1 %v760_v0, %s2460_s18  ;;  %1612 = vrot.lane.b32.xlu0 %v759_v13, %s2460_s18 }
 0x396   : > { %1618 = vrot.lane.b32.xlu1 %v762_v49, %s2460_s18  ;;  %1616 = vrot.lane.b32.xlu0 %v761_v7, %s2460_s18 }
 0x39a   : > { %1654 = vrot.lane.b32.xlu1 %v760_v0, %s2461_s19  ;;  %1652 = vrot.lane.b32.xlu0 %v759_v13, %s2461_s19 }
 0x39e   : > { %1658 = vrot.lane.b32.xlu1 %v762_v49, %s2461_s19  ;;  %1656 = vrot.lane.b32.xlu0 %v761_v7, %s2461_s19 }
 0x404   : > { %v1615_v51 = vpop.permute.xlu1 %1614  ;;  %v1613_v14 = vpop.permute.xlu0 %1612 }
 0x408   : > { %v1619_v61 = vpop.permute.xlu1 %1618  ;;  %v1617_v25 = vpop.permute.xlu0 %1616 }
 0x40c   : > { %v1655_v47 = vpop.permute.xlu1 %1654  ;;  %v1653_v33 = vpop.permute.xlu0 %1652 }
 0x410   : > { %v1659_v54 = vpop.permute.xlu1 %1658  ;;  %v1657_v39 = vpop.permute.xlu0 %1656 }
 0x45f   : > { %v2204_v56 = vpop.f32.mrb[20].mxu1 }
 0x460   : > { %v1595_v19 = vadd.f32 %v2204_v56, %v1913_v55  ;;  %v1589_v22 = vpop.f32.mrb[21].mxu1 }
 0x461   : > { %v1590_v50 = vadd.f32 %v1913_v55, %v1589_v22 }
 0x462   : > { %v1625_v57 = vadd.f32 %v1615_v51, %v1595_v19 }
 0x463   : > { %v1624_v11 = vadd.f32 %v1613_v14, %v1590_v50  ;;  %v2207_v58 = vpop.f32.mrb[22].mxu1 }
 0x464   : > { %v1915_v23 = vmul.f32 -1.442695, %v1625_v57  ;;  %v1605_v15 = vadd.f32 %v2207_v58, %v1913_v55  ;;  %v1599_v4 = vpop.f32.mrb[23].mxu1 }
 0x465   : > { %v1914_v1 = vmul.f32 -1.442695, %v1624_v11  ;;  %v1600_v24 = vadd.f32 %v1913_v55, %v1599_v4 }
 0x466   : > { %2405 = vpow2.f32 %v1915_v23  ;;  %v1627_v29 = vadd.f32 %v1619_v61, %v1605_v15 }
 0x467   : > { %2407 = vpow2.f32 %v1914_v1  ;;  %v1626_v32 = vadd.f32 %v1617_v25, %v1600_v24 }
 0x468   : > { %v1917_v34 = vmul.f32 -1.442695, %v1627_v29 }
 0x469   : > { %v1916_v35 = vmul.f32 -1.442695, %v1626_v32 }
 0x46a   : > { %2409 = vpow2.f32 %v1917_v34 }
 0x46b   : > { %2411 = vpow2.f32 %v1916_v35 }
 0x470   : > { %v2406_v36 = vpop.eup %2405 }
 0x471   : > { %v2408_v43 = vpop.eup %2407  ;;  %v1641_v16 = vadd.f32 1.0, %v2406_v36 }
 0x472   : > { %v1640_v44 = vadd.f32 1.0, %v2408_v43 }
 0x473   : > { %2413 = vrcp.f32 %v1641_v16 }
 0x474   : > { %v2410_v45 = vpop.eup %2409  ;;  %2415 = vrcp.f32 %v1640_v44 }
 0x475   : > { %v2412_v46 = vpop.eup %2411  ;;  %v1643_v20 = vadd.f32 1.0, %v2410_v45 }
 0x476   : > { %v1642_v30 = vadd.f32 1.0, %v2412_v46 }
 0x477   : > { %2417 = vrcp.f32 %v1643_v20 }
 0x478   : > { %2419 = vrcp.f32 %v1642_v30 }
 0x47d   : > { %v2414_v48 = vpop.eup %2413 }
 0x47e   : > { %v2416_v8 = vpop.eup %2415  ;;  %v1665_v52 = vmul.f32 %v2414_v48, %v1655_v47  ;;  %v1693_v37 = vsub.f32 1.0, %v2414_v48 }
 0x47f   : > { %v1664_v21 = vmul.f32 %v2416_v8, %v1653_v33  ;;  %v1692_v13 = vsub.f32 1.0, %v2416_v8 }
 0x480   : > { %1674 = vrot.lane.b32.xlu1 %v1665_v52, %s2457_s25 }
 0x481   : > { %v2418_v53 = vpop.eup %2417  ;;  %1672 = vrot.lane.b32.xlu0 %v1664_v21, %s2457_s25 }
 0x482   : > { %v2420_v59 = vpop.eup %2419  ;;  %v1667_v60 = vmul.f32 %v2418_v53, %v1659_v54  ;;  %v1695_v23 = vsub.f32 1.0, %v2418_v53 }
 0x483   : > { %v1666_v63 = vmul.f32 %v2420_v59, %v1657_v39  ;;  %v1694_v4 = vsub.f32 1.0, %v2420_v59 }
 0x484   : > { %1678 = vrot.lane.b32.xlu1 %v1667_v60, %s2457_s25 }
 0x485   : > { %1676 = vrot.lane.b32.xlu0 %v1666_v63, %s2457_s25 }
 0x488   : > { %1718 = vrot.lane.b32.xlu1 %v2437_v12, %s2456_s23 }
 0x489   : > { %1716 = vrot.lane.b32.xlu0 %v2438_v42, %s2456_s23 }
 0x4f2   : > { %v1675_v17 = vpop.permute.xlu1 %1674 }
 0x4f3   : > { %v1685_v2 = vadd.f32 %v1675_v17, %v1595_v19  ;;  %v1673_v62 = vpop.permute.xlu0 %1672 }
 0x4f4   : > { %v1684_v26 = vadd.f32 %v1673_v62, %v1590_v50 }
 0x4f5   : > { %2421 = vtanh.f32 %v1685_v2 }
 0x4f6   : > { %2423 = vtanh.f32 %v1684_v26  ;;  %v1679_v38 = vpop.permute.xlu1 %1678 }
 0x4f7   : > { %v1687_v3 = vadd.f32 %v1679_v38, %v1605_v15  ;;  %v1677_v31 = vpop.permute.xlu0 %1676 }
 0x4f8   : > { %v1686_v10 = vadd.f32 %v1677_v31, %v1600_v24 }
 0x4f9   : > { %2425 = vtanh.f32 %v1687_v3 }
 0x4fa   : > { %2427 = vtanh.f32 %v1686_v10  ;;  %v1719_v18 = vpop.permute.xlu1 %1718 }
 0x4fb   : > { %v1717_v41 = vpop.permute.xlu0 %1716  ;;  %v1729_v49 = vmul.f32 %v2414_v48, %v1719_v18 }
 0x4fc   : > { %v1728_v51 = vmul.f32 %v2416_v8, %v1717_v41 }
 0x4ff   : > { %v2422_v5 = vpop.eup %2421 }
 0x500   : > { %v2424_v6 = vpop.eup %2423  ;;  %1702 = vrot.lane.b32.xlu1 %v2422_v5, %s2458_s29 }
 0x501   : > { %1700 = vrot.lane.b32.xlu0 %v2424_v6, %s2458_s29 }
 0x503   : > { %v2426_v27 = vpop.eup %2425 }
 0x504   : > { %v2428_v40 = vpop.eup %2427  ;;  %1706 = vrot.lane.b32.xlu1 %v2426_v27, %s2458_s29 }
 0x505   : > { %1704 = vrot.lane.b32.xlu0 %v2428_v40, %s2458_s29 }
 0x508   : > { %1722 = vrot.lane.b32.xlu1 %v2439_v9, %s2456_s23 }
 0x509   : > { %1720 = vrot.lane.b32.xlu0 %v2440_v28, %s2456_s23 }
 0x572   : > { %v1703_v0 = vpop.permute.xlu1 %1702 }
 0x573   : > { %v1713_v7 = vmul.f32 %v1703_v0, %v1693_v37  ;;  %v1701_v55 = vpop.permute.xlu0 %1700 }
 0x574   : > { %v1712_v56 = vmul.f32 %v1701_v55, %v1692_v13 }
 0x575   : > { %v1733_v14 = vadd.f32 %v1729_v49, %v1713_v7 }
 0x576   : > { %v1732_v19 = vadd.f32 %v1728_v51, %v1712_v56  ;;  %v1707_v22 = vpop.permute.xlu1 %1706 }
 0x577   : > { %v1741_v50 = vmin.f32 %v1733_v14, 0.0  ;;  %v1705_v57 = vpop.permute.xlu0 %1704  ;;  %v1715_v1 = vmul.f32 %v1707_v22, %v1695_v23  ;;  %vm1737_vm7 = vcmp.gt.f32.partialorder %v1733_v14, 0.0 }
 0x578   : > { %v1740_v11 = vmin.f32 %v1732_v19, 0.0  ;;  %v1714_v29 = vmul.f32 %v1705_v57, %v1694_v4  ;;  %vm1736_vm9 = vcmp.gt.f32.partialorder %v1732_v19, 0.0 }
 0x579   : > { %v1746_v58 = vmul.f32 1.442695, %v1741_v50 }
 0x57a   : > { %v1744_v15 = vmul.f32 1.442695, %v1740_v11  ;;  %v1723_v61 = vpop.permute.xlu1 %1722 }
 0x57b   : > { %2429 = vpow2.f32 %v1746_v58  ;;  %v1731_v24 = vmul.f32 %v2418_v53, %v1723_v61  ;;  %v1721_v25 = vpop.permute.xlu0 %1720 }
 0x57c   : > { %2431 = vpow2.f32 %v1744_v15  ;;  %v1730_v32 = vmul.f32 %v2420_v59, %v1721_v25 }
 0x57d   : > { %v1735_v34 = vadd.f32 %v1731_v24, %v1715_v1 }
 0x57e   : > { %v1734_v35 = vadd.f32 %v1730_v32, %v1714_v29 }
 0x57f   : > { %v1743_v36 = vmin.f32 %v1735_v34, 0.0  ;;  %vm1739_vm12 = vcmp.gt.f32.partialorder %v1735_v34, 0.0 }
 0x580   : > { %v1742_v43 = vmin.f32 %v1734_v35, 0.0  ;;  %vm1738_vm13 = vcmp.gt.f32.partialorder %v1734_v35, 0.0 }
 0x581   : > { %v1750_v16 = vmul.f32 1.442695, %v1743_v36 }
 0x582   : > { %v1748_v44 = vmul.f32 1.442695, %v1742_v43 }
 0x583   : > { %2433 = vpow2.f32 %v1750_v16 }
 0x584   : > { %2435 = vpow2.f32 %v1748_v44 }
 0x585   : > { %v2430_v45 = vpop.eup %2429 }
 0x586   : > { %v2432_v46 = vpop.eup %2431  ;;  %v1919_v20 = vadd.f32 -1.0, %v2430_v45 }
 0x587   : > { %v1918_v30 = vadd.f32 -1.0, %v2432_v46 }
 0x588   : > { %v1757_v47 = vsel %vm1737_vm7, %v1733_v14, %v1919_v20 }
 0x589   : > { %1766 = vrot.lane.b32.xlu1 %v1757_v47, %s2458_s29  ;;  %v1756_v33 = vsel %vm1736_vm9, %v1732_v19, %v1918_v30 }
 0x58a   : > { %1764 = vrot.lane.b32.xlu0 %v1756_v33, %s2458_s29 }
 0x58d   : > { %v2434_v48 = vpop.eup %2433 }
 0x58e   : > { %v2436_v8 = vpop.eup %2435  ;;  %v1921_v52 = vadd.f32 -1.0, %v2434_v48 }
 0x58f   : > { %v1920_v21 = vadd.f32 -1.0, %v2436_v8 }
 0x590   : > { %v1759_v53 = vsel %vm1739_vm12, %v1735_v34, %v1921_v52 }
 0x591   : > { %1770 = vrot.lane.b32.xlu1 %v1759_v53, %s2458_s29  ;;  %v1758_v54 = vsel %vm1738_vm13, %v1734_v35, %v1920_v21 }
 0x592   : > { %1768 = vrot.lane.b32.xlu0 %v1758_v54, %s2458_s29 }
 0x5fb   : > { %v1767_v59 = vpop.permute.xlu1 %1766 }
 0x5fc   : > { %1777 = vst.msk [vmem:[%s351_s22 + $0x8] sm:$0xff] %vm399_vm0, %v1767_v59  ;;  %v1765_v39 = vpop.permute.xlu0 %1764 }
 0x5fd   : > { %1776 = vst.msk [vmem:[%s351_s22] sm:$0xff] %vm399_vm0, %v1765_v39 }
 0x603   : > { %v1771_v60 = vpop.permute.xlu1 %1770 }
 0x604   : > { %1779 = vst.msk [vmem:[%s351_s22 + $0x18] sm:$0xff] %vm399_vm0, %v1771_v60  ;;  %v1769_v63 = vpop.permute.xlu0 %1768 }
 0x605   : > { %1778 = vst.msk [vmem:[%s351_s22 + $0x10] sm:$0xff] %vm399_vm0, %v1769_v63 }
 0x606 PF: > { %s19_s30 = sadd.s32 1, %s2447_s30  }
 0x607   : > { %p16_p5 = scmp.ge.s32.totalorder %s19_s30, 6  }
 0x609   :  { %18 = sbr.rel (!%p16_p5) target bundleno = 1 (0x1), region = 89 }

</bundles_post_ra>
